<compile_context>
chip_gen: v7x
topology: tpu7x:2x2x1
jax: 0.10.0
libtpu: 0.0.40
codegen_flags: <defaults>
</compile_context>

<pallas_src>
import functools
import math

import jax
import jax.numpy as jnp
from jax.experimental import pallas as pl
from jax.experimental.pallas import tpu as pltpu

# dtype fed to the MXU (accumulation is always f32).  Set to jnp.float32 to
# reproduce the PyTorch module's numerics exactly; bf16 is the MXU fast path.
MATMUL_DTYPE = jnp.bfloat16


# ----------------------------------------------------------------------------
# small helpers
# ----------------------------------------------------------------------------
def _full_spec(arr):
    """Whole-array block with a constant index map (weights / shared operands)."""
    return pl.BlockSpec(arr.shape, lambda *_: (0,) * arr.ndim)


def _split_heads_stack(t, num_heads):
    """(..., S, D) -> (H, ..., S, dh): stack contiguous lane slices on a new
    leading axis (cheap slice/concat glue; all matmuls stay head-batched)."""
    dh = t.shape[-1] // num_heads
    return jnp.stack([t[..., h * dh:(h + 1) * dh] for h in range(num_heads)],
                     axis=0)


# ----------------------------------------------------------------------------
# Kernel 1: batched MAB for the final  mab(I.repeat(B,1,1), X)  call.
# Queries come from the shared inducing set I, keys/values from a block of
# batch elements of X.
# ----------------------------------------------------------------------------
def _mab_batch_kernel(i_ref, x_ref,
                      wq_ref, bq_ref, wkv_ref, bkv_ref, wo_ref, bo_ref,
                      o_ref, *, num_heads, scale, mm_dtype):
    Bb, Sk, dy = x_ref.shape
    Sq, D = i_ref.shape
    H = num_heads
    dh = D // H

    # Shared queries: I is identical for every batch element, so project it
    # once per grid step (not per batch element) and fold the 1/sqrt(D) scale
    # into q here instead of scaling every (Sq, Sk) logits tile.
    q = jnp.dot(i_ref[...].astype(mm_dtype), wq_ref[...],
                preferred_element_type=jnp.float32) + bq_ref[...]          # (Sq, D) f32
    q_s = (q * scale).astype(mm_dtype)

    # Fused K|V projection: one wide (dy -> 2D) matmul over the whole block.
    x = x_ref[...].astype(mm_dtype)                                        # (Bb, Sk, dy)
    wkv = jnp.broadcast_to(wkv_ref[...], (Bb,) + wkv_ref.shape)
    kv = jnp.einsum('bsy,byf->bsf', x, wkv,
                    preferred_element_type=jnp.float32) + bkv_ref[...]     # (Bb, Sk, 2D) f32
    k = kv[..., :D].astype(mm_dtype)
    v = kv[..., D:].astype(mm_dtype)

    # Head-batched attention: fold (head, batch) into one leading axis Z=H*Bb
    # so logits / softmax / weighted sum are each a single batched op.
    Z = H * Bb
    qz = jnp.broadcast_to(_split_heads_stack(q_s, H)[:, None],
                          (H, Bb, Sq, dh)).reshape(Z, Sq, dh)
    kz = _split_heads_stack(k, H).reshape(Z, Sk, dh)
    vz = _split_heads_stack(v, H).reshape(Z, Sk, dh)

    logits = jnp.einsum('zqd,zkd->zqk', qz, kz,
                        preferred_element_type=jnp.float32)                # (Z, Sq, Sk)
    m = jnp.max(logits, axis=-1, keepdims=True)
    e = jnp.exp(logits - m)
    # pl.reciprocal(..., approx=True) would move this to the EUP; kept exact to
    # hold the tight tolerance vs. the reference.
    p = e * pl.reciprocal(jnp.sum(e, axis=-1, keepdims=True))
    attn_z = jnp.einsum('zqk,zkd->zqd', p.astype(mm_dtype), vz,
                        preferred_element_type=jnp.float32)                # (Z, Sq, dh)

    # Merge heads back onto the lane (feature) axis.
    attn4 = attn_z.reshape(H, Bb, Sq, dh)
    attn = jnp.concatenate([attn4[h] for h in range(H)], axis=-1)          # (Bb, Sq, D)

    # residual + relu(fc_o) residual  (ln=Identity, dropout=Identity).
    o = jnp.broadcast_to(q, (Bb, Sq, D)) + attn
    wo = jnp.broadcast_to(wo_ref[...], (Bb, D, D))
    ff = jnp.einsum('bqd,bdf->bqf', o.astype(mm_dtype), wo,
                    preferred_element_type=jnp.float32) + bo_ref[...]
    o_ref[...] = (o + jnp.maximum(ff, 0.0)).astype(o_ref.dtype)


# ----------------------------------------------------------------------------
# Kernel 2: the whole PMA seeding loop fused into one kernel.
# The growing inducing set lives in the output VMEM block; each static step
# appends one token produced by MAB(pma_I, current I).
# ----------------------------------------------------------------------------
def _pma_seed_kernel(i0_ref, pq_ref,
                     wq_ref, bq_ref, wkv_ref, bkv_ref, wo_ref, bo_ref,
                     i_ref, *, num_iters, num_heads, scale, mm_dtype):
    D = i_ref.shape[-1]
    H = num_heads

    # The PMA query source (learned inducing point) is constant across the
    # iterations -> project it once.
    q = jnp.dot(pq_ref[...].astype(mm_dtype), wq_ref[...],
                preferred_element_type=jnp.float32) + bq_ref[...]          # (1, D)
    qh = _split_heads_stack((q * scale).astype(mm_dtype), H)               # (H, 1, dh)

    i_ref[0:1, :] = i0_ref[...]                                            # seed token 0
    for t in range(1, num_iters):                                          # static unroll
        y = i_ref[0:t, :].astype(mm_dtype)                                 # (t, D)
        kv = jnp.dot(y, wkv_ref[...],
                     preferred_element_type=jnp.float32) + bkv_ref[...]    # (t, 2D)
        kh = _split_heads_stack(kv[:, :D].astype(mm_dtype), H)             # (H, t, dh)
        vh = _split_heads_stack(kv[:, D:].astype(mm_dtype), H)

        logits = jnp.einsum('hqd,hkd->hqk', qh, kh,
                            preferred_element_type=jnp.float32)            # (H, 1, t)
        m = jnp.max(logits, axis=-1, keepdims=True)
        e = jnp.exp(logits - m)
        p = e * pl.reciprocal(jnp.sum(e, axis=-1, keepdims=True))
        attn_h = jnp.einsum('hqk,hkd->hqd', p.astype(mm_dtype), vh,
                            preferred_element_type=jnp.float32)            # (H, 1, dh)
        attn = jnp.concatenate([attn_h[h] for h in range(H)], axis=-1)     # (1, D)

        o = q + attn
        ff = jnp.dot(o.astype(mm_dtype), wo_ref[...],
                     preferred_element_type=jnp.float32) + bo_ref[...]
        i_ref[t:t + 1, :] = o + jnp.maximum(ff, 0.0)


# ----------------------------------------------------------------------------
# Wrappers
# ----------------------------------------------------------------------------
def _prep_mab_params(p, mm_dtype=MATMUL_DTYPE):
    """Host/trace-time prep: fuse K|V weights and pre-cast weights to the MXU
    dtype once; biases stay f32 (added after f32 accumulation)."""
    return dict(
        wq=p["wq"].astype(mm_dtype),
        bq=p["bq"].astype(jnp.float32),
        wkv=jnp.concatenate([p["wk"], p["wv"]], axis=1).astype(mm_dtype),
        bkv=jnp.concatenate([p["bk"], p["bv"]], axis=1).astype(jnp.float32),
        wo=p["wo"].astype(mm_dtype),
        bo=p["bo"].astype(jnp.float32),
    )


def pma_seed_pallas(prep, i0, pma_i, num_iters, num_heads):
    """Build the (num_iters, dim) inducing set with a single fused kernel."""
    D = i0.shape[-1]
    if num_iters <= 1:
        return i0.reshape(1, D).astype(jnp.float32)
    kernel = functools.partial(_pma_seed_kernel, num_iters=num_iters,
                               num_heads=num_heads, scale=1.0 / math.sqrt(D),
                               mm_dtype=MATMUL_DTYPE)
    args = (i0.reshape(1, D), pma_i.reshape(1, D),
            prep["wq"], prep["bq"], prep["wkv"], prep["bkv"],
            prep["wo"], prep["bo"])
    grid_spec = pltpu.PrefetchScalarGridSpec(
        num_scalar_prefetch=0, grid=(1,),
        in_specs=[_full_spec(a) for a in args],
        out_specs=pl.BlockSpec((num_iters, D), lambda i: (0, 0)),
    )
    return pl.pallas_call(
        kernel,
        out_shape=jax.ShapeDtypeStruct((num_iters, D), jnp.float32),
        grid_spec=grid_spec,
        compiler_params=pltpu.CompilerParams(dimension_semantics=("arbitrary",)),
    )(*args)


def mab_batched_pallas(I, X, prep, num_heads, block_b=8):
    """MAB with shared queries I (Sq, D) and per-batch keys/values X (B, Sk, dy)."""
    B, Sk, dy = X.shape
    Sq, D = I.shape
    Bb = max(1, min(block_b, B))
    n_blocks = pl.cdiv(B, Bb)
    Bpad = n_blocks * Bb
    X = X.astype(MATMUL_DTYPE)                      # halve activation DMA bytes
    if Bpad != B:
        X = jnp.pad(X, ((0, Bpad - B), (0, 0), (0, 0)))

    kernel = functools.partial(_mab_batch_kernel, num_heads=num_heads,
                               scale=1.0 / math.sqrt(D), mm_dtype=MATMUL_DTYPE)
    grid_spec = pltpu.PrefetchScalarGridSpec(
        num_scalar_prefetch=0, grid=(n_blocks,),
        in_specs=[
            _full_spec(I),                                     # shared queries source
            pl.BlockSpec((Bb, Sk, dy), lambda b: (b, 0, 0)),   # batch block of X
            _full_spec(prep["wq"]), _full_spec(prep["bq"]),
            _full_spec(prep["wkv"]), _full_spec(prep["bkv"]),
            _full_spec(prep["wo"]), _full_spec(prep["bo"]),
        ],
        out_specs=pl.BlockSpec((Bb, Sq, D), lambda b: (b, 0, 0)),
        # NOTE: the constant-index weight blocks could use
        # pipeline_mode=pl.Buffered(1) to skip double-buffering; irrelevant at
        # dim=32 so left at the default.  vmem_limit_bytes would be set here if
        # dim/Sk grew enough to matter on v7x's 64 MiB VMEM.
    )
    out = pl.pallas_call(
        kernel,
        out_shape=jax.ShapeDtypeStruct((Bpad, Sq, D), jnp.float32),
        grid_spec=grid_spec,
        compiler_params=pltpu.CompilerParams(
            dimension_semantics=("parallel",)),    # megacore split on v7x
    )(I, X, prep["wq"], prep["bq"], prep["wkv"], prep["bkv"],
      prep["wo"], prep["bo"])
    return out[:B]


def apma_forward(params, X, num_iters, num_heads=4, block_b=8):
    dim = params["I0"].shape[-1]
    assert dim % num_heads == 0
    pma_prep = _prep_mab_params(params["pma_mab"])
    mab_prep = _prep_mab_params(params["mab"])
    # 1) grow the inducing set (one fused kernel)
    I = pma_seed_pallas(pma_prep, params["I0"], params["pma_I"],
                        num_iters, num_heads)                 # (num_iters, dim)
    # 2) final MAB over the batch
    return mab_batched_pallas(I, X, mab_prep, num_heads, block_b)


# ----------------------------------------------------------------------------
# Pure-JAX reference mirroring the PyTorch chunk/cat semantics AND the kernels'
# bf16-matmul / f32-accumulate cast points (so the check is tight).
# ----------------------------------------------------------------------------
def _mab_ref(x, y, p, num_heads, mm_dtype=MATMUL_DTYPE):
    mm = lambda a, b: jnp.matmul(a.astype(mm_dtype), b.astype(mm_dtype),
                                 preferred_element_type=jnp.float32)
    q = mm(x, p["wq"]) + p["bq"][0]
    k = mm(y, p["wk"]) + p["bk"][0]
    v = mm(y, p["wv"]) + p["bv"][0]
    d = q.shape[-1]
    scale = 1.0 / math.sqrt(d)          # scale on q == logits/sqrt(d) in torch
    q_ = jnp.concatenate(jnp.split(q * scale, num_heads, axis=-1), axis=0)
    k_ = jnp.concatenate(jnp.split(k, num_heads, axis=-1), axis=0)
    v_ = jnp.concatenate(jnp.split(v, num_heads, axis=-1), axis=0)
    a = jax.nn.softmax(mm(q_, jnp.swapaxes(k_, -2, -1)), axis=-1)
    attn = jnp.concatenate(jnp.split(mm(a, v_), num_heads, axis=0), axis=-1)
    o = q + attn
    return o + jax.nn.relu(mm(o, p["wo"]) + p["bo"][0])


def _apma_ref(params, X, num_iters, num_heads=4):
    I = params["I0"]                                           # (1, 1, dim)
    for _ in range(1, num_iters):
        inds = params["pma_I"][None]                           # (1, 1, dim)
        new_tok = _mab_ref(inds, I, params["pma_mab"], num_heads)
        I = jnp.concatenate([I, new_tok], axis=1)
    B = X.shape[0]
    Iq = jnp.broadcast_to(I, (B,) + I.shape[1:])
    return _mab_ref(Iq, X, params["mab"], num_heads)


# ----------------------------------------------------------------------------
# Deterministic parameter init (shapes follow the module's __init__).
# ----------------------------------------------------------------------------
def _init_linear(key, din, dout):
    kw, kb = jax.random.split(key)
    s = math.sqrt(2.0 / (din + dout))
    w = jax.random.normal(kw, (din, dout), jnp.float32) * s
    b = jax.random.normal(kb, (1, dout), jnp.float32) * 0.02
    return w, b


def _init_mab(key, dim_x, dim_y, dim):
    kq, kk, kv, ko = jax.random.split(key, 4)
    wq, bq = _init_linear(kq, dim_x, dim)
    wk, bk = _init_linear(kk, dim_y, dim)
    wv, bv = _init_linear(kv, dim_y, dim)
    wo, bo = _init_linear(ko, dim, dim)
    return dict(wq=wq, bq=bq, wk=wk, bk=bk, wv=wv, bv=bv, wo=wo, bo=bo)


def init_apma_params(key, dim_x, dim):
    k0, k1, k2, k3 = jax.random.split(key, 4)
    return {
        "I0": jax.random.normal(k0, (1, 1, dim), jnp.float32)
              * math.sqrt(2.0 / (1 + dim)),
        "pma_I": jax.random.normal(k1, (1, dim), jnp.float32)
                 * math.sqrt(2.0 / (1 + dim)),
        "pma_mab": _init_mab(k2, dim, dim, dim),    # PMA's MAB(dim, dim, dim)
        "mab": _init_mab(k3, dim, dim_x, dim),      # top-level MAB(dim, dim_X, dim)
    }


if __name__ == "__main__":
    dim_X, dim = 16, 32        # dim divisible by num_heads=4
    B, N = 2, 8
    num_iters = 3

    key = jax.random.PRNGKey(0)
    kp, kx = jax.random.split(key)
    params = init_apma_params(kp, dim_X, dim)
    X = jax.random.normal(kx, (B, N, dim_X), jnp.float32)

    fwd = jax.jit(apma_forward,
                  static_argnames=("num_iters", "num_heads", "block_b"))
    out = jax.block_until_ready(fwd(params, X, num_iters=num_iters))

    ref = _apma_ref(params, X, num_iters)
    assert out.shape == (B, num_iters, dim), out.shape
    max_err = float(jnp.max(jnp.abs(out - ref)))
    assert jnp.allclose(out, ref, atol=5e-3, rtol=5e-3), max_err

    print("KERNEL_OK")
</pallas_src>

<mosaic_0001>
module attributes {stable_mosaic.version = 11 : i64} {
  func.func @_pma_seed_kernel(%arg0: i32, %arg1: memref<1x32xf32, #tpu.memory_space<vmem>>, %arg2: memref<1x32xf32, #tpu.memory_space<vmem>>, %arg3: memref<32x32xbf16, #tpu.memory_space<vmem>>, %arg4: memref<1x32xf32, #tpu.memory_space<vmem>>, %arg5: memref<32x64xbf16, #tpu.memory_space<vmem>>, %arg6: memref<1x64xf32, #tpu.memory_space<vmem>>, %arg7: memref<32x32xbf16, #tpu.memory_space<vmem>>, %arg8: memref<1x32xf32, #tpu.memory_space<vmem>>, %arg9: memref<3x32xf32, #tpu.memory_space<vmem>>) attributes {dimension_semantics = [#tpu.dimension_semantics<arbitrary>], iteration_bounds = array<i64: 1>, scalar_prefetch = 0 : i64, scratch_operands = 0 : i64, tpu.core_type = #tpu.core_type<tc>, window_params = [{pipeline_mode = #tpu.pipeline_mode<synchronous>, transform_indices = @transform_0, window_bounds = array<i64: 1, 32>}, {pipeline_mode = #tpu.pipeline_mode<synchronous>, transform_indices = @transform_1, window_bounds = array<i64: 1, 32>}, {pipeline_mode = #tpu.pipeline_mode<synchronous>, transform_indices = @transform_2, window_bounds = array<i64: 32, 32>}, {pipeline_mode = #tpu.pipeline_mode<synchronous>, transform_indices = @transform_3, window_bounds = array<i64: 1, 32>}, {pipeline_mode = #tpu.pipeline_mode<synchronous>, transform_indices = @transform_4, window_bounds = array<i64: 32, 64>}, {pipeline_mode = #tpu.pipeline_mode<synchronous>, transform_indices = @transform_5, window_bounds = array<i64: 1, 64>}, {pipeline_mode = #tpu.pipeline_mode<synchronous>, transform_indices = @transform_6, window_bounds = array<i64: 32, 32>}, {pipeline_mode = #tpu.pipeline_mode<synchronous>, transform_indices = @transform_7, window_bounds = array<i64: 1, 32>}, {pipeline_mode = #tpu.pipeline_mode<synchronous>, transform_indices = @transform_8, window_bounds = array<i64: 3, 32>}]} {
    %c0 = arith.constant 0 : index
    %c0_0 = arith.constant 0 : index
    %0 = vector.load %arg2[%c0, %c0_0] : memref<1x32xf32, #tpu.memory_space<vmem>>, vector<1x32xf32>
    %1 = arith.truncf %0 : vector<1x32xf32> to vector<1x32xbf16>
    %c0_1 = arith.constant 0 : index
    %c0_2 = arith.constant 0 : index
    %2 = vector.load %arg3[%c0_1, %c0_2] : memref<32x32xbf16, #tpu.memory_space<vmem>>, vector<32x32xbf16>
    %cst = arith.constant dense<0.000000e+00> : vector<1x32xf32>
    %3 = tpu.matmul %1, %2, %cst {dimension_numbers = #tpu.dot_dimension_numbers<[1], [0], [0], [1], [0, 0, 1, 1], [], []>} : vector<1x32xbf16>, vector<32x32xbf16>, vector<1x32xf32> -> vector<1x32xf32>
    %c0_3 = arith.constant 0 : index
    %c0_4 = arith.constant 0 : index
    %4 = vector.load %arg4[%c0_3, %c0_4] : memref<1x32xf32, #tpu.memory_space<vmem>>, vector<1x32xf32>
    %5 = arith.addf %3, %4 : vector<1x32xf32>
    %cst_5 = arith.constant 0.176776692 : f32
    %6 = vector.broadcast %cst_5 : f32 to vector<1x32xf32>
    %7 = arith.mulf %5, %6 : vector<1x32xf32>
    %8 = arith.truncf %7 : vector<1x32xf32> to vector<1x32xbf16>
    %9 = vector.extract_strided_slice %8 {offsets = [0, 0], sizes = [1, 8], strides = [1, 1]} : vector<1x32xbf16> to vector<1x8xbf16>
    %10 = vector.extract_strided_slice %8 {offsets = [0, 8], sizes = [1, 8], strides = [1, 1]} : vector<1x32xbf16> to vector<1x8xbf16>
    %11 = vector.extract_strided_slice %8 {offsets = [0, 16], sizes = [1, 8], strides = [1, 1]} : vector<1x32xbf16> to vector<1x8xbf16>
    %12 = vector.extract_strided_slice %8 {offsets = [0, 24], sizes = [1, 8], strides = [1, 1]} : vector<1x32xbf16> to vector<1x8xbf16>
    %13 = vector.shape_cast %9 : vector<1x8xbf16> to vector<1x1x8xbf16>
    %14 = vector.shape_cast %10 : vector<1x8xbf16> to vector<1x1x8xbf16>
    %15 = vector.shape_cast %11 : vector<1x8xbf16> to vector<1x1x8xbf16>
    %16 = vector.shape_cast %12 : vector<1x8xbf16> to vector<1x1x8xbf16>
    %17 = tpu.concatenate %13, %14, %15, %16 in 0 : vector<1x1x8xbf16>, vector<1x1x8xbf16>, vector<1x1x8xbf16>, vector<1x1x8xbf16> -> vector<4x1x8xbf16>
    %c0_6 = arith.constant 0 : index
    %c0_7 = arith.constant 0 : index
    %18 = vector.load %arg1[%c0_6, %c0_7] : memref<1x32xf32, #tpu.memory_space<vmem>>, vector<1x32xf32>
    %c0_8 = arith.constant 0 : index
    %c0_9 = arith.constant 0 : index
    %19 = vector.load %arg9[%c0_8, %c0_9] : memref<3x32xf32, #tpu.memory_space<vmem>>, vector<1x32xf32>
    tpu.vector_store %arg9[%c0_8, %c0_9], %18 {strides = array<i32>} : memref<3x32xf32, #tpu.memory_space<vmem>>, vector<1x32xf32>,
    %c0_10 = arith.constant 0 : index
    %c0_11 = arith.constant 0 : index
    %20 = vector.load %arg9[%c0_10, %c0_11] : memref<3x32xf32, #tpu.memory_space<vmem>>, vector<1x32xf32>
    %21 = arith.truncf %20 : vector<1x32xf32> to vector<1x32xbf16>
    %c0_12 = arith.constant 0 : index
    %c0_13 = arith.constant 0 : index
    %22 = vector.load %arg5[%c0_12, %c0_13] : memref<32x64xbf16, #tpu.memory_space<vmem>>, vector<32x64xbf16>
    %cst_14 = arith.constant dense<0.000000e+00> : vector<1x64xf32>
    %23 = tpu.matmul %21, %22, %cst_14 {dimension_numbers = #tpu.dot_dimension_numbers<[1], [0], [0], [1], [0, 0, 1, 1], [], []>} : vector<1x32xbf16>, vector<32x64xbf16>, vector<1x64xf32> -> vector<1x64xf32>
    %c0_15 = arith.constant 0 : index
    %c0_16 = arith.constant 0 : index
    %24 = vector.load %arg6[%c0_15, %c0_16] : memref<1x64xf32, #tpu.memory_space<vmem>>, vector<1x64xf32>
    %25 = arith.addf %23, %24 : vector<1x64xf32>
    %26 = vector.extract_strided_slice %25 {offsets = [0, 0], sizes = [1, 32], strides = [1, 1]} : vector<1x64xf32> to vector<1x32xf32>
    %27 = arith.truncf %26 : vector<1x32xf32> to vector<1x32xbf16>
    %28 = vector.extract_strided_slice %27 {offsets = [0, 0], sizes = [1, 8], strides = [1, 1]} : vector<1x32xbf16> to vector<1x8xbf16>
    %29 = vector.extract_strided_slice %27 {offsets = [0, 8], sizes = [1, 8], strides = [1, 1]} : vector<1x32xbf16> to vector<1x8xbf16>
    %30 = vector.extract_strided_slice %27 {offsets = [0, 16], sizes = [1, 8], strides = [1, 1]} : vector<1x32xbf16> to vector<1x8xbf16>
    %31 = vector.extract_strided_slice %27 {offsets = [0, 24], sizes = [1, 8], strides = [1, 1]} : vector<1x32xbf16> to vector<1x8xbf16>
    %32 = vector.shape_cast %28 : vector<1x8xbf16> to vector<1x1x8xbf16>
    %33 = vector.shape_cast %29 : vector<1x8xbf16> to vector<1x1x8xbf16>
    %34 = vector.shape_cast %30 : vector<1x8xbf16> to vector<1x1x8xbf16>
    %35 = vector.shape_cast %31 : vector<1x8xbf16> to vector<1x1x8xbf16>
    %36 = tpu.concatenate %32, %33, %34, %35 in 0 : vector<1x1x8xbf16>, vector<1x1x8xbf16>, vector<1x1x8xbf16>, vector<1x1x8xbf16> -> vector<4x1x8xbf16>
    %37 = vector.extract_strided_slice %25 {offsets = [0, 32], sizes = [1, 32], strides = [1, 1]} : vector<1x64xf32> to vector<1x32xf32>
    %38 = arith.truncf %37 : vector<1x32xf32> to vector<1x32xbf16>
    %39 = vector.extract_strided_slice %38 {offsets = [0, 0], sizes = [1, 8], strides = [1, 1]} : vector<1x32xbf16> to vector<1x8xbf16>
    %40 = vector.extract_strided_slice %38 {offsets = [0, 8], sizes = [1, 8], strides = [1, 1]} : vector<1x32xbf16> to vector<1x8xbf16>
    %41 = vector.extract_strided_slice %38 {offsets = [0, 16], sizes = [1, 8], strides = [1, 1]} : vector<1x32xbf16> to vector<1x8xbf16>
    %42 = vector.extract_strided_slice %38 {offsets = [0, 24], sizes = [1, 8], strides = [1, 1]} : vector<1x32xbf16> to vector<1x8xbf16>
    %43 = vector.shape_cast %39 : vector<1x8xbf16> to vector<1x1x8xbf16>
    %44 = vector.shape_cast %40 : vector<1x8xbf16> to vector<1x1x8xbf16>
    %45 = vector.shape_cast %41 : vector<1x8xbf16> to vector<1x1x8xbf16>
    %46 = vector.shape_cast %42 : vector<1x8xbf16> to vector<1x1x8xbf16>
    %47 = tpu.concatenate %43, %44, %45, %46 in 0 : vector<1x1x8xbf16>, vector<1x1x8xbf16>, vector<1x1x8xbf16>, vector<1x1x8xbf16> -> vector<4x1x8xbf16>
    "tpu.trace_start"() <{level = 10 : i32, message = "hqd,hkd->hqk"}> : () -> ()
    %cst_17 = arith.constant dense<0.000000e+00> : vector<4x1x1xf32>
    %48 = tpu.matmul %17, %36, %cst_17 {dimension_numbers = #tpu.dot_dimension_numbers<[2], [2], [1], [1], [0, 0, 0, 1, 1, 1], [0], [0]>} : vector<4x1x8xbf16>, vector<4x1x8xbf16>, vector<4x1x1xf32> -> vector<4x1x1xf32>
    "tpu.trace_stop"() : () -> ()
    %cst_18 = arith.constant dense<0xFF800000> : vector<4x1xf32>
    %49 = vector.multi_reduction <maximumf>, %48, %cst_18 [2] : vector<4x1x1xf32> to vector<4x1xf32>
    %50 = vector.shape_cast %49 : vector<4x1xf32> to vector<4x1x1xf32>
    %51 = arith.subf %48, %50 : vector<4x1x1xf32>
    %52 = math.exp %51 : vector<4x1x1xf32>
    %cst_19 = arith.constant dense<0.000000e+00> : vector<4x1xf32>
    %53 = vector.multi_reduction <add>, %52, %cst_19 [2] : vector<4x1x1xf32> to vector<4x1xf32>
    %54 = vector.shape_cast %53 : vector<4x1xf32> to vector<4x1x1xf32>
    %55 = tpu.reciprocal %54 : vector<4x1x1xf32> -> vector<4x1x1xf32>
    %56 = arith.mulf %52, %55 : vector<4x1x1xf32>
    %57 = arith.truncf %56 : vector<4x1x1xf32> to vector<4x1x1xbf16>
    "tpu.trace_start"() <{level = 10 : i32, message = "hqk,hkd->hqd"}> : () -> ()
    %cst_20 = arith.constant dense<0.000000e+00> : vector<4x1x8xf32>
    %58 = tpu.matmul %57, %47, %cst_20 {dimension_numbers = #tpu.dot_dimension_numbers<[2], [1], [1], [2], [0, 0, 0, 1, 1, 2], [0], [0]>} : vector<4x1x1xbf16>, vector<4x1x8xbf16>, vector<4x1x8xf32> -> vector<4x1x8xf32>
    "tpu.trace_stop"() : () -> ()
    %59 = vector.extract_strided_slice %58 {offsets = [0, 0, 0], sizes = [1, 1, 8], strides = [1, 1, 1]} : vector<4x1x8xf32> to vector<1x1x8xf32>
    %60 = vector.shape_cast %59 : vector<1x1x8xf32> to vector<1x8xf32>
    %61 = vector.extract_strided_slice %58 {offsets = [1, 0, 0], sizes = [1, 1, 8], strides = [1, 1, 1]} : vector<4x1x8xf32> to vector<1x1x8xf32>
    %62 = vector.shape_cast %61 : vector<1x1x8xf32> to vector<1x8xf32>
    %63 = vector.extract_strided_slice %58 {offsets = [2, 0, 0], sizes = [1, 1, 8], strides = [1, 1, 1]} : vector<4x1x8xf32> to vector<1x1x8xf32>
    %64 = vector.shape_cast %63 : vector<1x1x8xf32> to vector<1x8xf32>
    %65 = vector.extract_strided_slice %58 {offsets = [3, 0, 0], sizes = [1, 1, 8], strides = [1, 1, 1]} : vector<4x1x8xf32> to vector<1x1x8xf32>
    %66 = vector.shape_cast %65 : vector<1x1x8xf32> to vector<1x8xf32>
    %67 = tpu.concatenate %60, %62, %64, %66 in 1 : vector<1x8xf32>, vector<1x8xf32>, vector<1x8xf32>, vector<1x8xf32> -> vector<1x32xf32>
    %68 = arith.addf %5, %67 : vector<1x32xf32>
    %69 = arith.truncf %68 : vector<1x32xf32> to vector<1x32xbf16>
    %c0_21 = arith.constant 0 : index
    %c0_22 = arith.constant 0 : index
    %70 = vector.load %arg7[%c0_21, %c0_22] : memref<32x32xbf16, #tpu.memory_space<vmem>>, vector<32x32xbf16>
    %cst_23 = arith.constant dense<0.000000e+00> : vector<1x32xf32>
    %71 = tpu.matmul %69, %70, %cst_23 {dimension_numbers = #tpu.dot_dimension_numbers<[1], [0], [0], [1], [0, 0, 1, 1], [], []>} : vector<1x32xbf16>, vector<32x32xbf16>, vector<1x32xf32> -> vector<1x32xf32>
    %c0_24 = arith.constant 0 : index
    %c0_25 = arith.constant 0 : index
    %72 = vector.load %arg8[%c0_24, %c0_25] : memref<1x32xf32, #tpu.memory_space<vmem>>, vector<1x32xf32>
    %73 = arith.addf %71, %72 : vector<1x32xf32>
    %cst_26 = arith.constant 0.000000e+00 : f32
    %74 = vector.broadcast %cst_26 : f32 to vector<1x32xf32>
    %75 = arith.maximumf %73, %74 : vector<1x32xf32>
    %76 = arith.addf %68, %75 : vector<1x32xf32>
    %c1 = arith.constant 1 : index
    %c0_27 = arith.constant 0 : index
    %77 = vector.load %arg9[%c1, %c0_27] : memref<3x32xf32, #tpu.memory_space<vmem>>, vector<1x32xf32>
    tpu.vector_store %arg9[%c1, %c0_27], %76 {strides = array<i32>} : memref<3x32xf32, #tpu.memory_space<vmem>>, vector<1x32xf32>,
    %c0_28 = arith.constant 0 : index
    %c0_29 = arith.constant 0 : index
    %78 = vector.load %arg9[%c0_28, %c0_29] : memref<3x32xf32, #tpu.memory_space<vmem>>, vector<2x32xf32>
    %79 = arith.truncf %78 : vector<2x32xf32> to vector<2x32xbf16>
    %c0_30 = arith.constant 0 : index
    %c0_31 = arith.constant 0 : index
    %80 = vector.load %arg5[%c0_30, %c0_31] : memref<32x64xbf16, #tpu.memory_space<vmem>>, vector<32x64xbf16>
    %cst_32 = arith.constant dense<0.000000e+00> : vector<2x64xf32>
    %81 = tpu.matmul %79, %80, %cst_32 {dimension_numbers = #tpu.dot_dimension_numbers<[1], [0], [0], [1], [0, 0, 1, 1], [], []>} : vector<2x32xbf16>, vector<32x64xbf16>, vector<2x64xf32> -> vector<2x64xf32>
    %c0_33 = arith.constant 0 : index
    %c0_34 = arith.constant 0 : index
    %82 = vector.load %arg6[%c0_33, %c0_34] : memref<1x64xf32, #tpu.memory_space<vmem>>, vector<1x64xf32>
    %83 = vector.broadcast %82 : vector<1x64xf32> to vector<2x64xf32>
    %84 = arith.addf %81, %83 : vector<2x64xf32>
    %85 = vector.extract_strided_slice %84 {offsets = [0, 0], sizes = [2, 32], strides = [1, 1]} : vector<2x64xf32> to vector<2x32xf32>
    %86 = arith.truncf %85 : vector<2x32xf32> to vector<2x32xbf16>
    %87 = vector.extract_strided_slice %86 {offsets = [0, 0], sizes = [2, 8], strides = [1, 1]} : vector<2x32xbf16> to vector<2x8xbf16>
    %88 = vector.extract_strided_slice %86 {offsets = [0, 8], sizes = [2, 8], strides = [1, 1]} : vector<2x32xbf16> to vector<2x8xbf16>
    %89 = vector.extract_strided_slice %86 {offsets = [0, 16], sizes = [2, 8], strides = [1, 1]} : vector<2x32xbf16> to vector<2x8xbf16>
    %90 = vector.extract_strided_slice %86 {offsets = [0, 24], sizes = [2, 8], strides = [1, 1]} : vector<2x32xbf16> to vector<2x8xbf16>
    %91 = vector.shape_cast %87 : vector<2x8xbf16> to vector<1x2x8xbf16>
    %92 = vector.shape_cast %88 : vector<2x8xbf16> to vector<1x2x8xbf16>
    %93 = vector.shape_cast %89 : vector<2x8xbf16> to vector<1x2x8xbf16>
    %94 = vector.shape_cast %90 : vector<2x8xbf16> to vector<1x2x8xbf16>
    %95 = tpu.concatenate %91, %92, %93, %94 in 0 : vector<1x2x8xbf16>, vector<1x2x8xbf16>, vector<1x2x8xbf16>, vector<1x2x8xbf16> -> vector<4x2x8xbf16>
    %96 = vector.extract_strided_slice %84 {offsets = [0, 32], sizes = [2, 32], strides = [1, 1]} : vector<2x64xf32> to vector<2x32xf32>
    %97 = arith.truncf %96 : vector<2x32xf32> to vector<2x32xbf16>
    %98 = vector.extract_strided_slice %97 {offsets = [0, 0], sizes = [2, 8], strides = [1, 1]} : vector<2x32xbf16> to vector<2x8xbf16>
    %99 = vector.extract_strided_slice %97 {offsets = [0, 8], sizes = [2, 8], strides = [1, 1]} : vector<2x32xbf16> to vector<2x8xbf16>
    %100 = vector.extract_strided_slice %97 {offsets = [0, 16], sizes = [2, 8], strides = [1, 1]} : vector<2x32xbf16> to vector<2x8xbf16>
    %101 = vector.extract_strided_slice %97 {offsets = [0, 24], sizes = [2, 8], strides = [1, 1]} : vector<2x32xbf16> to vector<2x8xbf16>
    %102 = vector.shape_cast %98 : vector<2x8xbf16> to vector<1x2x8xbf16>
    %103 = vector.shape_cast %99 : vector<2x8xbf16> to vector<1x2x8xbf16>
    %104 = vector.shape_cast %100 : vector<2x8xbf16> to vector<1x2x8xbf16>
    %105 = vector.shape_cast %101 : vector<2x8xbf16> to vector<1x2x8xbf16>
    %106 = tpu.concatenate %102, %103, %104, %105 in 0 : vector<1x2x8xbf16>, vector<1x2x8xbf16>, vector<1x2x8xbf16>, vector<1x2x8xbf16> -> vector<4x2x8xbf16>
    "tpu.trace_start"() <{level = 10 : i32, message = "hqd,hkd->hqk"}> : () -> ()
    %cst_35 = arith.constant dense<0.000000e+00> : vector<4x1x2xf32>
    %107 = tpu.matmul %17, %95, %cst_35 {dimension_numbers = #tpu.dot_dimension_numbers<[2], [2], [1], [1], [0, 0, 0, 1, 1, 1], [0], [0]>} : vector<4x1x8xbf16>, vector<4x2x8xbf16>, vector<4x1x2xf32> -> vector<4x1x2xf32>
    "tpu.trace_stop"() : () -> ()
    %cst_36 = arith.constant dense<0xFF800000> : vector<4x1xf32>
    %108 = vector.multi_reduction <maximumf>, %107, %cst_36 [2] : vector<4x1x2xf32> to vector<4x1xf32>
    %109 = vector.shape_cast %108 : vector<4x1xf32> to vector<4x1x1xf32>
    %110 = vector.broadcast %109 : vector<4x1x1xf32> to vector<4x1x2xf32>
    %111 = arith.subf %107, %110 : vector<4x1x2xf32>
    %112 = math.exp %111 : vector<4x1x2xf32>
    %cst_37 = arith.constant dense<0.000000e+00> : vector<4x1xf32>
    %113 = vector.multi_reduction <add>, %112, %cst_37 [2] : vector<4x1x2xf32> to vector<4x1xf32>
    %114 = vector.shape_cast %113 : vector<4x1xf32> to vector<4x1x1xf32>
    %115 = tpu.reciprocal %114 : vector<4x1x1xf32> -> vector<4x1x1xf32>
    %116 = vector.broadcast %115 : vector<4x1x1xf32> to vector<4x1x2xf32>
    %117 = arith.mulf %112, %116 : vector<4x1x2xf32>
    %118 = arith.truncf %117 : vector<4x1x2xf32> to vector<4x1x2xbf16>
    "tpu.trace_start"() <{level = 10 : i32, message = "hqk,hkd->hqd"}> : () -> ()
    %cst_38 = arith.constant dense<0.000000e+00> : vector<4x1x8xf32>
    %119 = tpu.matmul %118, %106, %cst_38 {dimension_numbers = #tpu.dot_dimension_numbers<[2], [1], [1], [2], [0, 0, 0, 1, 1, 2], [0], [0]>} : vector<4x1x2xbf16>, vector<4x2x8xbf16>, vector<4x1x8xf32> -> vector<4x1x8xf32>
    "tpu.trace_stop"() : () -> ()
    %120 = vector.extract_strided_slice %119 {offsets = [0, 0, 0], sizes = [1, 1, 8], strides = [1, 1, 1]} : vector<4x1x8xf32> to vector<1x1x8xf32>
    %121 = vector.shape_cast %120 : vector<1x1x8xf32> to vector<1x8xf32>
    %122 = vector.extract_strided_slice %119 {offsets = [1, 0, 0], sizes = [1, 1, 8], strides = [1, 1, 1]} : vector<4x1x8xf32> to vector<1x1x8xf32>
    %123 = vector.shape_cast %122 : vector<1x1x8xf32> to vector<1x8xf32>
    %124 = vector.extract_strided_slice %119 {offsets = [2, 0, 0], sizes = [1, 1, 8], strides = [1, 1, 1]} : vector<4x1x8xf32> to vector<1x1x8xf32>
    %125 = vector.shape_cast %124 : vector<1x1x8xf32> to vector<1x8xf32>
    %126 = vector.extract_strided_slice %119 {offsets = [3, 0, 0], sizes = [1, 1, 8], strides = [1, 1, 1]} : vector<4x1x8xf32> to vector<1x1x8xf32>
    %127 = vector.shape_cast %126 : vector<1x1x8xf32> to vector<1x8xf32>
    %128 = tpu.concatenate %121, %123, %125, %127 in 1 : vector<1x8xf32>, vector<1x8xf32>, vector<1x8xf32>, vector<1x8xf32> -> vector<1x32xf32>
    %129 = arith.addf %5, %128 : vector<1x32xf32>
    %130 = arith.truncf %129 : vector<1x32xf32> to vector<1x32xbf16>
    %c0_39 = arith.constant 0 : index
    %c0_40 = arith.constant 0 : index
    %131 = vector.load %arg7[%c0_39, %c0_40] : memref<32x32xbf16, #tpu.memory_space<vmem>>, vector<32x32xbf16>
    %cst_41 = arith.constant dense<0.000000e+00> : vector<1x32xf32>
    %132 = tpu.matmul %130, %131, %cst_41 {dimension_numbers = #tpu.dot_dimension_numbers<[1], [0], [0], [1], [0, 0, 1, 1], [], []>} : vector<1x32xbf16>, vector<32x32xbf16>, vector<1x32xf32> -> vector<1x32xf32>
    %c0_42 = arith.constant 0 : index
    %c0_43 = arith.constant 0 : index
    %133 = vector.load %arg8[%c0_42, %c0_43] : memref<1x32xf32, #tpu.memory_space<vmem>>, vector<1x32xf32>
    %134 = arith.addf %132, %133 : vector<1x32xf32>
    %cst_44 = arith.constant 0.000000e+00 : f32
    %135 = vector.broadcast %cst_44 : f32 to vector<1x32xf32>
    %136 = arith.maximumf %134, %135 : vector<1x32xf32>
    %137 = arith.addf %129, %136 : vector<1x32xf32>
    %c2 = arith.constant 2 : index
    %c0_45 = arith.constant 0 : index
    %138 = vector.load %arg9[%c2, %c0_45] : memref<3x32xf32, #tpu.memory_space<vmem>>, vector<1x32xf32>
    tpu.vector_store %arg9[%c2, %c0_45], %137 {strides = array<i32>} : memref<3x32xf32, #tpu.memory_space<vmem>>, vector<1x32xf32>,
    return
  }
  func.func @transform_0(%arg0: i32) -> (i32, i32) {
    %c0_i32 = arith.constant 0 : i32
    %c0_i32_0 = arith.constant 0 : i32
    %c0_i32_1 = arith.constant 0 : i32
    return %c0_i32, %c0_i32_0 : i32, i32
  }
  func.func @transform_1(%arg0: i32) -> (i32, i32) {
    %c0_i32 = arith.constant 0 : i32
    %c0_i32_0 = arith.constant 0 : i32
    %c0_i32_1 = arith.constant 0 : i32
    return %c0_i32, %c0_i32_0 : i32, i32
  }
  func.func @transform_2(%arg0: i32) -> (i32, i32) {
    %c0_i32 = arith.constant 0 : i32
    %c0_i32_0 = arith.constant 0 : i32
    %c0_i32_1 = arith.constant 0 : i32
    return %c0_i32, %c0_i32_0 : i32, i32
  }
  func.func @transform_3(%arg0: i32) -> (i32, i32) {
    %c0_i32 = arith.constant 0 : i32
    %c0_i32_0 = arith.constant 0 : i32
    %c0_i32_1 = arith.constant 0 : i32
    return %c0_i32, %c0_i32_0 : i32, i32
  }
  func.func @transform_4(%arg0: i32) -> (i32, i32) {
    %c0_i32 = arith.constant 0 : i32
    %c0_i32_0 = arith.constant 0 : i32
    %c0_i32_1 = arith.constant 0 : i32
    return %c0_i32, %c0_i32_0 : i32, i32
  }
  func.func @transform_5(%arg0: i32) -> (i32, i32) {
    %c0_i32 = arith.constant 0 : i32
    %c0_i32_0 = arith.constant 0 : i32
    %c0_i32_1 = arith.constant 0 : i32
    return %c0_i32, %c0_i32_0 : i32, i32
  }
  func.func @transform_6(%arg0: i32) -> (i32, i32) {
    %c0_i32 = arith.constant 0 : i32
    %c0_i32_0 = arith.constant 0 : i32
    %c0_i32_1 = arith.constant 0 : i32
    return %c0_i32, %c0_i32_0 : i32, i32
  }
  func.func @transform_7(%arg0: i32) -> (i32, i32) {
    %c0_i32 = arith.constant 0 : i32
    %c0_i32_0 = arith.constant 0 : i32
    %c0_i32_1 = arith.constant 0 : i32
    return %c0_i32, %c0_i32_0 : i32, i32
  }
  func.func @transform_8(%arg0: i32) -> (i32, i32) {
    %c0_i32 = arith.constant 0 : i32
    %c0_i32_0 = arith.constant 0 : i32
    %c0_i32_1 = arith.constant 0 : i32
    return %c0_i32, %c0_i32_0 : i32, i32
  }
}

module attributes {stable_mosaic.version = 11 : i64} {
  func.func @_mab_batch_kernel(%arg0: i32, %arg1: memref<3x32xf32, #tpu.memory_space<vmem>>, %arg2: memref<2x8x16xbf16, #tpu.memory_space<vmem>>, %arg3: memref<32x32xbf16, #tpu.memory_space<vmem>>, %arg4: memref<1x32xf32, #tpu.memory_space<vmem>>, %arg5: memref<16x64xbf16, #tpu.memory_space<vmem>>, %arg6: memref<1x64xf32, #tpu.memory_space<vmem>>, %arg7: memref<32x32xbf16, #tpu.memory_space<vmem>>, %arg8: memref<1x32xf32, #tpu.memory_space<vmem>>, %arg9: memref<2x3x32xf32, #tpu.memory_space<vmem>>) attributes {dimension_semantics = [#tpu.dimension_semantics<parallel>], iteration_bounds = array<i64: 1>, scalar_prefetch = 0 : i64, scratch_operands = 0 : i64, tpu.core_type = #tpu.core_type<tc>, window_params = [{pipeline_mode = #tpu.pipeline_mode<synchronous>, transform_indices = @transform_0, window_bounds = array<i64: 3, 32>}, {transform_indices = @transform_1, window_bounds = array<i64: 2, 8, 16>}, {pipeline_mode = #tpu.pipeline_mode<synchronous>, transform_indices = @transform_2, window_bounds = array<i64: 32, 32>}, {pipeline_mode = #tpu.pipeline_mode<synchronous>, transform_indices = @transform_3, window_bounds = array<i64: 1, 32>}, {pipeline_mode = #tpu.pipeline_mode<synchronous>, transform_indices = @transform_4, window_bounds = array<i64: 16, 64>}, {pipeline_mode = #tpu.pipeline_mode<synchronous>, transform_indices = @transform_5, window_bounds = array<i64: 1, 64>}, {pipeline_mode = #tpu.pipeline_mode<synchronous>, transform_indices = @transform_6, window_bounds = array<i64: 32, 32>}, {pipeline_mode = #tpu.pipeline_mode<synchronous>, transform_indices = @transform_7, window_bounds = array<i64: 1, 32>}, {transform_indices = @transform_8, window_bounds = array<i64: 2, 3, 32>}]} {
    %c0 = arith.constant 0 : index
    %c0_0 = arith.constant 0 : index
    %0 = vector.load %arg1[%c0, %c0_0] : memref<3x32xf32, #tpu.memory_space<vmem>>, vector<3x32xf32>
    %1 = arith.truncf %0 : vector<3x32xf32> to vector<3x32xbf16>
    %c0_1 = arith.constant 0 : index
    %c0_2 = arith.constant 0 : index
    %2 = vector.load %arg3[%c0_1, %c0_2] : memref<32x32xbf16, #tpu.memory_space<vmem>>, vector<32x32xbf16>
    %cst = arith.constant dense<0.000000e+00> : vector<3x32xf32>
    %3 = tpu.matmul %1, %2, %cst {dimension_numbers = #tpu.dot_dimension_numbers<[1], [0], [0], [1], [0, 0, 1, 1], [], []>} : vector<3x32xbf16>, vector<32x32xbf16>, vector<3x32xf32> -> vector<3x32xf32>
    %c0_3 = arith.constant 0 : index
    %c0_4 = arith.constant 0 : index
    %4 = vector.load %arg4[%c0_3, %c0_4] : memref<1x32xf32, #tpu.memory_space<vmem>>, vector<1x32xf32>
    %5 = vector.broadcast %4 : vector<1x32xf32> to vector<3x32xf32>
    %6 = arith.addf %3, %5 : vector<3x32xf32>
    %cst_5 = arith.constant 0.176776692 : f32
    %7 = vector.broadcast %cst_5 : f32 to vector<3x32xf32>
    %8 = arith.mulf %6, %7 : vector<3x32xf32>
    %9 = arith.truncf %8 : vector<3x32xf32> to vector<3x32xbf16>
    %c0_6 = arith.constant 0 : index
    %c0_7 = arith.constant 0 : index
    %c0_8 = arith.constant 0 : index
    %10 = vector.load %arg2[%c0_6, %c0_7, %c0_8] : memref<2x8x16xbf16, #tpu.memory_space<vmem>>, vector<2x8x16xbf16>
    %c0_9 = arith.constant 0 : index
    %c0_10 = arith.constant 0 : index
    %11 = vector.load %arg5[%c0_9, %c0_10] : memref<16x64xbf16, #tpu.memory_space<vmem>>, vector<16x64xbf16>
    %12 = vector.shape_cast %11 : vector<16x64xbf16> to vector<1x16x64xbf16>
    %13 = vector.broadcast %12 : vector<1x16x64xbf16> to vector<2x16x64xbf16>
    "tpu.trace_start"() <{level = 10 : i32, message = "bsy,byf->bsf"}> : () -> ()
    %cst_11 = arith.constant dense<0.000000e+00> : vector<2x8x64xf32>
    %14 = tpu.matmul %10, %13, %cst_11 {dimension_numbers = #tpu.dot_dimension_numbers<[2], [1], [1], [2], [0, 0, 0, 1, 1, 2], [0], [0]>} : vector<2x8x16xbf16>, vector<2x16x64xbf16>, vector<2x8x64xf32> -> vector<2x8x64xf32>
    "tpu.trace_stop"() : () -> ()
    %c0_12 = arith.constant 0 : index
    %c0_13 = arith.constant 0 : index
    %15 = vector.load %arg6[%c0_12, %c0_13] : memref<1x64xf32, #tpu.memory_space<vmem>>, vector<1x64xf32>
    %16 = vector.shape_cast %15 : vector<1x64xf32> to vector<1x1x64xf32>
    %17 = vector.broadcast %16 : vector<1x1x64xf32> to vector<2x8x64xf32>
    %18 = arith.addf %14, %17 : vector<2x8x64xf32>
    %19 = vector.extract_strided_slice %18 {offsets = [0, 0, 0], sizes = [2, 8, 32], strides = [1, 1, 1]} : vector<2x8x64xf32> to vector<2x8x32xf32>
    %20 = arith.truncf %19 : vector<2x8x32xf32> to vector<2x8x32xbf16>
    %21 = vector.extract_strided_slice %18 {offsets = [0, 0, 32], sizes = [2, 8, 32], strides = [1, 1, 1]} : vector<2x8x64xf32> to vector<2x8x32xf32>
    %22 = arith.truncf %21 : vector<2x8x32xf32> to vector<2x8x32xbf16>
    %23 = vector.extract_strided_slice %9 {offsets = [0, 0], sizes = [3, 8], strides = [1, 1]} : vector<3x32xbf16> to vector<3x8xbf16>
    %24 = vector.extract_strided_slice %9 {offsets = [0, 8], sizes = [3, 8], strides = [1, 1]} : vector<3x32xbf16> to vector<3x8xbf16>
    %25 = vector.extract_strided_slice %9 {offsets = [0, 16], sizes = [3, 8], strides = [1, 1]} : vector<3x32xbf16> to vector<3x8xbf16>
    %26 = vector.extract_strided_slice %9 {offsets = [0, 24], sizes = [3, 8], strides = [1, 1]} : vector<3x32xbf16> to vector<3x8xbf16>
    %27 = vector.shape_cast %23 : vector<3x8xbf16> to vector<1x3x8xbf16>
    %28 = vector.shape_cast %24 : vector<3x8xbf16> to vector<1x3x8xbf16>
    %29 = vector.shape_cast %25 : vector<3x8xbf16> to vector<1x3x8xbf16>
    %30 = vector.shape_cast %26 : vector<3x8xbf16> to vector<1x3x8xbf16>
    %31 = tpu.concatenate %27, %28, %29, %30 in 0 : vector<1x3x8xbf16>, vector<1x3x8xbf16>, vector<1x3x8xbf16>, vector<1x3x8xbf16> -> vector<4x3x8xbf16>
    %32 = vector.shape_cast %31 : vector<4x3x8xbf16> to vector<4x1x3x8xbf16>
    %33 = vector.shape_cast %32 : vector<4x1x3x8xbf16> to vector<4x1x3x8xbf16>
    %34 = vector.broadcast %33 : vector<4x1x3x8xbf16> to vector<4x2x3x8xbf16>
    %35 = vector.shape_cast %34 : vector<4x2x3x8xbf16> to vector<8x3x8xbf16>
    %36 = vector.extract_strided_slice %20 {offsets = [0, 0, 0], sizes = [2, 8, 8], strides = [1, 1, 1]} : vector<2x8x32xbf16> to vector<2x8x8xbf16>
    %37 = vector.extract_strided_slice %20 {offsets = [0, 0, 8], sizes = [2, 8, 8], strides = [1, 1, 1]} : vector<2x8x32xbf16> to vector<2x8x8xbf16>
    %38 = vector.extract_strided_slice %20 {offsets = [0, 0, 16], sizes = [2, 8, 8], strides = [1, 1, 1]} : vector<2x8x32xbf16> to vector<2x8x8xbf16>
    %39 = vector.extract_strided_slice %20 {offsets = [0, 0, 24], sizes = [2, 8, 8], strides = [1, 1, 1]} : vector<2x8x32xbf16> to vector<2x8x8xbf16>
    %40 = vector.shape_cast %36 : vector<2x8x8xbf16> to vector<1x2x8x8xbf16>
    %41 = vector.shape_cast %37 : vector<2x8x8xbf16> to vector<1x2x8x8xbf16>
    %42 = vector.shape_cast %38 : vector<2x8x8xbf16> to vector<1x2x8x8xbf16>
    %43 = vector.shape_cast %39 : vector<2x8x8xbf16> to vector<1x2x8x8xbf16>
    %44 = tpu.concatenate %40, %41, %42, %43 in 0 : vector<1x2x8x8xbf16>, vector<1x2x8x8xbf16>, vector<1x2x8x8xbf16>, vector<1x2x8x8xbf16> -> vector<4x2x8x8xbf16>
    %45 = vector.shape_cast %44 : vector<4x2x8x8xbf16> to vector<8x8x8xbf16>
    %46 = vector.extract_strided_slice %22 {offsets = [0, 0, 0], sizes = [2, 8, 8], strides = [1, 1, 1]} : vector<2x8x32xbf16> to vector<2x8x8xbf16>
    %47 = vector.extract_strided_slice %22 {offsets = [0, 0, 8], sizes = [2, 8, 8], strides = [1, 1, 1]} : vector<2x8x32xbf16> to vector<2x8x8xbf16>
    %48 = vector.extract_strided_slice %22 {offsets = [0, 0, 16], sizes = [2, 8, 8], strides = [1, 1, 1]} : vector<2x8x32xbf16> to vector<2x8x8xbf16>
    %49 = vector.extract_strided_slice %22 {offsets = [0, 0, 24], sizes = [2, 8, 8], strides = [1, 1, 1]} : vector<2x8x32xbf16> to vector<2x8x8xbf16>
    %50 = vector.shape_cast %46 : vector<2x8x8xbf16> to vector<1x2x8x8xbf16>
    %51 = vector.shape_cast %47 : vector<2x8x8xbf16> to vector<1x2x8x8xbf16>
    %52 = vector.shape_cast %48 : vector<2x8x8xbf16> to vector<1x2x8x8xbf16>
    %53 = vector.shape_cast %49 : vector<2x8x8xbf16> to vector<1x2x8x8xbf16>
    %54 = tpu.concatenate %50, %51, %52, %53 in 0 : vector<1x2x8x8xbf16>, vector<1x2x8x8xbf16>, vector<1x2x8x8xbf16>, vector<1x2x8x8xbf16> -> vector<4x2x8x8xbf16>
    %55 = vector.shape_cast %54 : vector<4x2x8x8xbf16> to vector<8x8x8xbf16>
    "tpu.trace_start"() <{level = 10 : i32, message = "zqd,zkd->zqk"}> : () -> ()
    %cst_14 = arith.constant dense<0.000000e+00> : vector<8x3x8xf32>
    %56 = tpu.matmul %35, %45, %cst_14 {dimension_numbers = #tpu.dot_dimension_numbers<[2], [2], [1], [1], [0, 0, 0, 1, 1, 1], [0], [0]>} : vector<8x3x8xbf16>, vector<8x8x8xbf16>, vector<8x3x8xf32> -> vector<8x3x8xf32>
    "tpu.trace_stop"() : () -> ()
    %cst_15 = arith.constant dense<0xFF800000> : vector<8x3xf32>
    %57 = vector.multi_reduction <maximumf>, %56, %cst_15 [2] : vector<8x3x8xf32> to vector<8x3xf32>
    %58 = vector.shape_cast %57 : vector<8x3xf32> to vector<8x3x1xf32>
    %59 = vector.broadcast %58 : vector<8x3x1xf32> to vector<8x3x8xf32>
    %60 = arith.subf %56, %59 : vector<8x3x8xf32>
    %61 = math.exp %60 : vector<8x3x8xf32>
    %cst_16 = arith.constant dense<0.000000e+00> : vector<8x3xf32>
    %62 = vector.multi_reduction <add>, %61, %cst_16 [2] : vector<8x3x8xf32> to vector<8x3xf32>
    %63 = vector.shape_cast %62 : vector<8x3xf32> to vector<8x3x1xf32>
    %64 = tpu.reciprocal %63 : vector<8x3x1xf32> -> vector<8x3x1xf32>
    %65 = vector.broadcast %64 : vector<8x3x1xf32> to vector<8x3x8xf32>
    %66 = arith.mulf %61, %65 : vector<8x3x8xf32>
    %67 = arith.truncf %66 : vector<8x3x8xf32> to vector<8x3x8xbf16>
    "tpu.trace_start"() <{level = 10 : i32, message = "zqk,zkd->zqd"}> : () -> ()
    %cst_17 = arith.constant dense<0.000000e+00> : vector<8x3x8xf32>
    %68 = tpu.matmul %67, %55, %cst_17 {dimension_numbers = #tpu.dot_dimension_numbers<[2], [1], [1], [2], [0, 0, 0, 1, 1, 2], [0], [0]>} : vector<8x3x8xbf16>, vector<8x8x8xbf16>, vector<8x3x8xf32> -> vector<8x3x8xf32>
    "tpu.trace_stop"() : () -> ()
    %69 = vector.shape_cast %68 : vector<8x3x8xf32> to vector<4x2x3x8xf32>
    %70 = vector.extract_strided_slice %69 {offsets = [0, 0, 0, 0], sizes = [1, 2, 3, 8], strides = [1, 1, 1, 1]} : vector<4x2x3x8xf32> to vector<1x2x3x8xf32>
    %71 = vector.shape_cast %70 : vector<1x2x3x8xf32> to vector<2x3x8xf32>
    %72 = vector.extract_strided_slice %69 {offsets = [1, 0, 0, 0], sizes = [1, 2, 3, 8], strides = [1, 1, 1, 1]} : vector<4x2x3x8xf32> to vector<1x2x3x8xf32>
    %73 = vector.shape_cast %72 : vector<1x2x3x8xf32> to vector<2x3x8xf32>
    %74 = vector.extract_strided_slice %69 {offsets = [2, 0, 0, 0], sizes = [1, 2, 3, 8], strides = [1, 1, 1, 1]} : vector<4x2x3x8xf32> to vector<1x2x3x8xf32>
    %75 = vector.shape_cast %74 : vector<1x2x3x8xf32> to vector<2x3x8xf32>
    %76 = vector.extract_strided_slice %69 {offsets = [3, 0, 0, 0], sizes = [1, 2, 3, 8], strides = [1, 1, 1, 1]} : vector<4x2x3x8xf32> to vector<1x2x3x8xf32>
    %77 = vector.shape_cast %76 : vector<1x2x3x8xf32> to vector<2x3x8xf32>
    %78 = tpu.concatenate %71, %73, %75, %77 in 2 : vector<2x3x8xf32>, vector<2x3x8xf32>, vector<2x3x8xf32>, vector<2x3x8xf32> -> vector<2x3x32xf32>
    %79 = vector.shape_cast %6 : vector<3x32xf32> to vector<1x3x32xf32>
    %80 = vector.broadcast %79 : vector<1x3x32xf32> to vector<2x3x32xf32>
    %81 = arith.addf %80, %78 : vector<2x3x32xf32>
    %c0_18 = arith.constant 0 : index
    %c0_19 = arith.constant 0 : index
    %82 = vector.load %arg7[%c0_18, %c0_19] : memref<32x32xbf16, #tpu.memory_space<vmem>>, vector<32x32xbf16>
    %83 = vector.shape_cast %82 : vector<32x32xbf16> to vector<1x32x32xbf16>
    %84 = vector.broadcast %83 : vector<1x32x32xbf16> to vector<2x32x32xbf16>
    %85 = arith.truncf %81 : vector<2x3x32xf32> to vector<2x3x32xbf16>
    "tpu.trace_start"() <{level = 10 : i32, message = "bqd,bdf->bqf"}> : () -> ()
    %cst_20 = arith.constant dense<0.000000e+00> : vector<2x3x32xf32>
    %86 = tpu.matmul %85, %84, %cst_20 {dimension_numbers = #tpu.dot_dimension_numbers<[2], [1], [1], [2], [0, 0, 0, 1, 1, 2], [0], [0]>} : vector<2x3x32xbf16>, vector<2x32x32xbf16>, vector<2x3x32xf32> -> vector<2x3x32xf32>
    "tpu.trace_stop"() : () -> ()
    %c0_21 = arith.constant 0 : index
    %c0_22 = arith.constant 0 : index
    %87 = vector.load %arg8[%c0_21, %c0_22] : memref<1x32xf32, #tpu.memory_space<vmem>>, vector<1x32xf32>
    %88 = vector.shape_cast %87 : vector<1x32xf32> to vector<1x1x32xf32>
    %89 = vector.broadcast %88 : vector<1x1x32xf32> to vector<2x3x32xf32>
    %90 = arith.addf %86, %89 : vector<2x3x32xf32>
    %cst_23 = arith.constant 0.000000e+00 : f32
    %91 = vector.broadcast %cst_23 : f32 to vector<2x3x32xf32>
    %92 = arith.maximumf %90, %91 : vector<2x3x32xf32>
    %93 = arith.addf %81, %92 : vector<2x3x32xf32>
    %c0_24 = arith.constant 0 : index
    %c0_25 = arith.constant 0 : index
    %c0_26 = arith.constant 0 : index
    %94 = vector.load %arg9[%c0_24, %c0_25, %c0_26] : memref<2x3x32xf32, #tpu.memory_space<vmem>>, vector<2x3x32xf32>
    tpu.vector_store %arg9[%c0_24, %c0_25, %c0_26], %93 {strides = array<i32>} : memref<2x3x32xf32, #tpu.memory_space<vmem>>, vector<2x3x32xf32>,
    return
  }
  func.func @transform_0(%arg0: i32) -> (i32, i32) {
    %c0_i32 = arith.constant 0 : i32
    %c0_i32_0 = arith.constant 0 : i32
    %c0_i32_1 = arith.constant 0 : i32
    return %c0_i32, %c0_i32_0 : i32, i32
  }
  func.func @transform_1(%arg0: i32) -> (i32, i32, i32) {
    %c0_i32 = arith.constant 0 : i32
    %c0_i32_0 = arith.constant 0 : i32
    %c0_i32_1 = arith.constant 0 : i32
    return %arg0, %c0_i32, %c0_i32_0 : i32, i32, i32
  }
  func.func @transform_2(%arg0: i32) -> (i32, i32) {
    %c0_i32 = arith.constant 0 : i32
    %c0_i32_0 = arith.constant 0 : i32
    %c0_i32_1 = arith.constant 0 : i32
    return %c0_i32, %c0_i32_0 : i32, i32
  }
  func.func @transform_3(%arg0: i32) -> (i32, i32) {
    %c0_i32 = arith.constant 0 : i32
    %c0_i32_0 = arith.constant 0 : i32
    %c0_i32_1 = arith.constant 0 : i32
    return %c0_i32, %c0_i32_0 : i32, i32
  }
  func.func @transform_4(%arg0: i32) -> (i32, i32) {
    %c0_i32 = arith.constant 0 : i32
    %c0_i32_0 = arith.constant 0 : i32
    %c0_i32_1 = arith.constant 0 : i32
    return %c0_i32, %c0_i32_0 : i32, i32
  }
  func.func @transform_5(%arg0: i32) -> (i32, i32) {
    %c0_i32 = arith.constant 0 : i32
    %c0_i32_0 = arith.constant 0 : i32
    %c0_i32_1 = arith.constant 0 : i32
    return %c0_i32, %c0_i32_0 : i32, i32
  }
  func.func @transform_6(%arg0: i32) -> (i32, i32) {
    %c0_i32 = arith.constant 0 : i32
    %c0_i32_0 = arith.constant 0 : i32
    %c0_i32_1 = arith.constant 0 : i32
    return %c0_i32, %c0_i32_0 : i32, i32
  }
  func.func @transform_7(%arg0: i32) -> (i32, i32) {
    %c0_i32 = arith.constant 0 : i32
    %c0_i32_0 = arith.constant 0 : i32
    %c0_i32_1 = arith.constant 0 : i32
    return %c0_i32, %c0_i32_0 : i32, i32
  }
  func.func @transform_8(%arg0: i32) -> (i32, i32, i32) {
    %c0_i32 = arith.constant 0 : i32
    %c0_i32_0 = arith.constant 0 : i32
    %c0_i32_1 = arith.constant 0 : i32
    return %arg0, %c0_i32, %c0_i32_0 : i32, i32, i32
  }
}

</mosaic_0001>

<bundles_post_ra>
// kernel: apma_forward.2
= control target key start
LH: loop header
LB: loop body
LE: loop exit
PB: predicated region body
PF: predicated region fallthrough
CT: control target
= control target key end

     0   :  { %v1507_v0 = vmov 0.0   ;;  %vm1508_vm0 = vmmov 0   ;;  %vm103_vm1 = vcmask 253952   ;;  %vm49_vm2 = vcmask 261120   ;;  %s1509_s22 = smov 120   ;;  %s1511_s23 = smov 112   ;;  %s1812_s2 = inlined_call_operand.vmem [shape: bf16[32,32], index: 2, kind: input, shape index: {}]   ;;  %s1813_s4 = inlined_call_operand.vmem [shape: bf16[32,64], index: 4, kind: input, shape index: {}]   ;;  %s1814_s1 = inlined_call_operand.vmem [shape: f32[1,32], index: 1, kind: input, shape index: {}]   ;;  %s1815_s0 = inlined_call_operand.vmem [shape: f32[1,32], index: 0, kind: input, shape index: {}]   ;;  %s1816_s8 = inlined_call_operand.vmem [shape: f32[3,32], index: 8, kind: output, shape index: {}]   ;;  %s1817_s3 = inlined_call_operand.vmem [shape: f32[1,32], index: 3, kind: input, shape index: {}]   ;;  %s1818_s5 = inlined_call_operand.vmem [shape: f32[1,64], index: 5, kind: input, shape index: {}]   ;;  %s1819_s6 = inlined_call_operand.vmem [shape: bf16[32,32], index: 6, kind: input, shape index: {}]   ;;  %s1820_s7 = inlined_call_operand.vmem [shape: f32[1,32], index: 7, kind: input, shape index: {}]  }
   0x1   :  { %1319 = vmatprep.subr.bf16.mxu0 %v1507_v0  ;;  %v1465_v1 = vld [vmem:[%s1812_s2] sm:$0xff]   ;;  %1327 = vmatprep.subr.bf16.mxu1 %v1507_v0  ;;  %v1467_v3 = vld [vmem:[%s1812_s2 + $0x8] sm:$0xff]   ;;  %vm175_vm3 = vcmask 64512   ;;  %s1512_s24 = smov 96   ;;  %vm394_vm4 = vcmask 1040384   ;;  %v1513_v34 = vmov 0  }
   0x2   :  { %v1466_v2 = vld [vmem:[%s1813_s4] sm:$0xff]   ;;  %1323 = vmatprep.mubr.msk.bf16.mxu0 %vm1508_vm0, %v1507_v0  ;;  %1331 = vmatprep.mubr.msk.bf16.mxu1 %vm1508_vm0, %v1507_v0  ;;  %v1468_v4 = vld [vmem:[%s1813_s4 + $0x8] sm:$0xff]   ;;  %v1645_v35 = vsel %vm394_vm4, 65535, %v1513_v34  ;;  %vm390_vm5 = vcmask 7168   ;;  %s1514_s29 = smov 8   ;;  %s1515_s30 = smov 16  }
   0x3   :  { %1320 = vmatpush3.bf16.msra.mxu0 %v1465_v1  ;;  %1328 = vmatpush3.bf16.msra.mxu1 %v1466_v2  ;;  %v30_v5 = vld [vmem:[%s1814_s1] sm:$0x1]  ;;  %s1516_s9 = smov 24   ;;  %vm597_vm6 = vcmask 130048   ;;  %vm599_vm7 = vcmask 195584   ;;  %vm914_vm8 = vcmask 8192  }
   0x4   :  { %1321 = vmatprep.subr.bf16.mxu0 %v1507_v0  ;;  %1329 = vmatprep.subr.bf16.mxu1 %v1507_v0  ;;  %v102_v6 = vld [vmem:[%s1815_s0] sm:$0x1]  ;;  %v31_v7 = vpack.c.bf16 %v30_v5, %v30_v5  ;;  %vm965_vm9 = vcmask 15360  }
   0x5   :  { %104 = vst.msk [vmem:[%s1816_s8] sm:$0x1] %vm103_vm1, %v102_v6  ;;  %v36_v10 = vld [vmem:[%s1817_s3] sm:$0x1]  ;;  %s1510_s3 = smov 104  }
   0x6   :  { %v111_v17 = vld [vmem:[%s1818_s5] sm:$0x1] }
   0x7   :  { %1322 = vmatpush3.bf16.msra.mxu0 %v1467_v3  ;;  %1330 = vmatpush3.bf16.msra.mxu1 %v1468_v4 }
   0x8   :  { %1335 = vmatprep.subr.bf16.mxu0 %v1507_v0  ;;  %1341 = vmatprep.subr.bf16.mxu1 %v1507_v0 }
   0xa   :  { %1324 = vmatmul.mubr.msk.bf16.vlgmr.msra.gmra.mrb[0].mxu0 %vm49_vm2, %v31_v7 }
   0xb   :  { %1337 = vmatprep.mubr.msk.bf16.mxu0 %vm1508_vm0, %v1507_v0 }
   0xc   :  { %v105_v8 = vld [vmem:[%s1816_s8] sm:$0x1] }
   0xd   :  { %v106_v9 = vpack.c.bf16 %v105_v8, %v105_v8 }
   0xf   :  { %1332 = vmatmul.mubr.msk.bf16.vlgmr.msra.gmra.mrb[0].mxu1 %vm49_vm2, %v106_v9 }
  0x10   :  { %1343 = vmatprep.mubr.msk.bf16.mxu1 %vm1508_vm0, %v1507_v0 }
  0xdd   :  { %v87_v11 = vpop.f32.mrb[0].mxu0 }
  0xde   :  { %v1606_v12 = vadd.f32 %v87_v11, %v36_v10  ;;  %v1325_v13 = vpop.f32.mrb[1].mxu0 }
  0xdf   :  { %v90_v14 = vpop.f32.mrb[2].mxu0 }
  0xe0   :  { %v93_v15 = vmul.f32 0.17677669, %v1606_v12  ;;  %v1326_v16 = vpop.f32.mrb[3].mxu0 }
  0xe2   :  { %v1612_v18 = vpack.c.bf16 %v93_v15, %v93_v15  ;;  %v161_v19 = vpop.f32.mrb[0].mxu1 }
  0xe3   :  { %v162_v20 = vadd.f32 %v161_v19, %v111_v17  ;;  %v1333_v21 = vpop.f32.mrb[1].mxu1 }
  0xe4   :  { %96 = vrot.lane.b32.xlu1 %v1612_v18, %s1509_s22  ;;  %v164_v22 = vpop.f32.mrb[2].mxu1 }
  0xe5   :  { %v167_v23 = vpack.c.bf16 %v162_v20, %v162_v20  ;;  %v1334_v24 = vpop.f32.mrb[3].mxu1 }
  0xe7   :  { %169 = vrot.lane.b32.xlu0 %v167_v23, %s1509_s22  ;;  %v180_v25 = vsel %vm175_vm3, %v167_v23, 0 }
  0xe8   :  { %173 = vrot.lane.b32.xlu1 %v167_v23, %s1510_s3  ;;  %1336 = vmatpush3.bf16.xpose.msra.mxu0 %v180_v25 }
  0xe9   :  { %1347 = vmatprep.subr.bf16.mxu0 %v1507_v0 }
  0xeb   :  { %171 = vrot.lane.b32.xlu0 %v167_v23, %s1511_s23 }
  0xec   :  { %100 = vrot.lane.b32.xlu1 %v1612_v18, %s1510_s3 }
  0xef   :  { %98 = vrot.lane.b32.xlu0 %v1612_v18, %s1511_s23  ;;  %1338 = vmatmul.mubr.msk.bf16.vlgmr.msra.gmra.mrb[4].mxu0 %vm175_vm3, %v1612_v18 }
  0xf0   :  { %1349 = vmatprep.mubr.msk.bf16.mxu0 %vm1508_vm0, %v1507_v0 }
  0xf3   :  { %388 = vrot.lane.b32.xlu0 %v167_v23, %s1512_s24 }
 0x156   :  { %v1630_v26 = vpop.permute.xlu1 %96 }
 0x159   :  { %v170_v27 = vpop.permute.xlu0 %169 }
 0x15a   :  { %v226_v28 = vsel %vm175_vm3, %v170_v27, 0  ;;  %440 = vrot.lane.b32.xlu1 %v170_v27, %s1512_s24  ;;  %v174_v29 = vpop.permute.xlu1 %173 }
 0x15b   :  { %1342 = vmatpush3.bf16.xpose.msra.mxu1 %v226_v28  ;;  %v318_v33 = vsel %vm175_vm3, %v174_v29, 0 }
 0x15c   :  { %1353 = vmatprep.subr.bf16.mxu1 %v1507_v0 }
 0x15d   :  { %v172_v30 = vpop.permute.xlu0 %171 }
 0x15e   :  { %v272_v31 = vsel %vm175_vm3, %v172_v30, 0  ;;  %488 = vrot.lane.b32.xlu0 %v172_v30, %s1512_s24  ;;  %536 = vrot.lane.b32.xlu1 %v174_v29, %s1512_s24  ;;  %v1655_v38 = vpop.permute.xlu1 %100  ;;  %v1469_v29 = vld [vmem:[%s1819_s6] sm:$0xff]   ;;  %v1470_v30 = vld [vmem:[%s1819_s6 + $0x8] sm:$0xff]  }
 0x15f   :  { %1348 = vmatpush3.bf16.xpose.msra.mxu0 %v272_v31 }
 0x160   :  { %1359 = vmatprep.subr.bf16.mxu0 %v1507_v0 }
 0x161   :  { %v1639_v32 = vpop.permute.xlu0 %98 }
 0x162   :  { %1344 = vmatmul.mubr.msk.bf16.vlgmr.msra.gmra.mrb[4].mxu1 %vm175_vm3, %v1630_v26 }
 0x163   :  { %1354 = vmatpush3.bf16.xpose.msra.mxu1 %v318_v33  ;;  %1355 = vmatprep.mubr.msk.bf16.mxu1 %vm1508_vm0, %v1507_v0 }
 0x164   :  { %1365 = vmatprep.subr.bf16.mxu1 %v1507_v0 }
 0x165   :  { %v389_v36 = vpop.permute.xlu0 %388 }
 0x166   :  { %v398_v37 = vand.u32 %v1645_v35, %v389_v36  ;;  %1350 = vmatmul.mubr.msk.bf16.vlgmr.msra.gmra.mrb[8].mxu0 %vm175_vm3, %v1639_v32 }
 0x167   :  { %1361 = vmatprep.mubr.msk.bf16.mxu0 %vm1508_vm0, %v1507_v0 }
 0x168   :  { %1360 = vmatpush3.bf16.msra.mxu0 %v398_v37 }
 0x169   :  { %1371 = vmatprep.subr.bf16.mxu0 %v1507_v0 }
 0x16a   :  { %1356 = vmatmul.mubr.msk.bf16.vlgmr.msra.gmra.mrb[8].mxu1 %vm175_vm3, %v1655_v38 }
 0x16b   :  { %1367 = vmatprep.mubr.msk.bf16.mxu1 %vm1508_vm0, %v1507_v0 }
 0x1c2   :  { %v216_v39 = vpop.f32.mrb[4].mxu0 }
 0x1c3   :  { %v360_v40 = vsub.f32 %v216_v39, %v216_v39  ;;  %v1339_v41 = vpop.f32.mrb[5].mxu0 }
 0x1c4   :  { %v219_v42 = vpop.f32.mrb[6].mxu0 }
 0x1c5   :  { %v364_v43 = vmul.f32 1.442695, %v360_v40  ;;  %v1340_v44 = vpop.f32.mrb[7].mxu0 }
 0x1c7   :  { %1475 = vpow2.f32 %v364_v43 }
 0x1cc   :  { %v441_v45 = vpop.permute.xlu1 %440 }
 0x1cd   :  { %v446_v46 = vand.u32 %v441_v45, %v1645_v35 }
 0x1cf   :  { %1366 = vmatpush3.bf16.msra.mxu1 %v446_v46 }
 0x1d0   :  { %1377 = vmatprep.subr.bf16.mxu1 %v1507_v0  ;;  %v489_v49 = vpop.permute.xlu0 %488  ;;  %v537_v13 = vpop.permute.xlu1 %536 }
 0x1d1   :  { %v1476_v47 = vpop.eup %1475  ;;  %v494_v52 = vand.u32 %v489_v49, %v1645_v35  ;;  %v542_v17 = vand.u32 %v537_v13, %v1645_v35 }
 0x1d2   :  { %1477 = vrcp.f32 %v1476_v47 }
 0x1dc   :  { %v1478_v48 = vpop.eup %1477 }
 0x1dd   :  { %v380_v50 = vmul.f32 %v1478_v48, %v1476_v47 }
 0x1df   :  { %v384_v51 = vpack.c.bf16 %v380_v50, %v380_v50 }
 0x1e1   :  { %1362 = vmatmul.mubr.msk.bf16.vlgmr.msra.gmra.mrb[12].mxu0 %vm390_vm5, %v384_v51 }
 0x1e2   :  { %1372 = vmatpush3.bf16.msra.mxu0 %v494_v52  ;;  %1373 = vmatprep.mubr.msk.bf16.mxu0 %vm1508_vm0, %v1507_v0 }
 0x1e3   :  { %1383 = vmatprep.subr.bf16.mxu0 %v1507_v0 }
 0x235   :  { %v262_v53 = vpop.f32.mrb[4].mxu1 }
 0x236   :  { %v361_v54 = vsub.f32 %v262_v53, %v262_v53  ;;  %v1345_v55 = vpop.f32.mrb[5].mxu1  ;;  %v1471_v53 = vld [vmem:[%s1813_s4] sm:$0xff]  }
 0x237   :  { %v265_v56 = vpop.f32.mrb[6].mxu1  ;;  %v607_v55 = vld [vmem:[%s1820_s7] sm:$0x1] }
 0x238   :  { %v366_v57 = vmul.f32 1.442695, %v361_v54  ;;  %v1346_v58 = vpop.f32.mrb[7].mxu1  ;;  %v1472_v54 = vld [vmem:[%s1813_s4 + $0x8] sm:$0xff]  }
 0x239   :  { %v308_v59 = vpop.f32.mrb[8].mxu0 }
 0x23a   :  { %1479 = vpow2.f32 %v366_v57  ;;  %v362_v60 = vsub.f32 %v308_v59, %v308_v59  ;;  %v1351_v61 = vpop.f32.mrb[9].mxu0 }
 0x23b   :  { %v311_v62 = vpop.f32.mrb[10].mxu0 }
 0x23c   :  { %v368_v63 = vmul.f32 1.442695, %v362_v60  ;;  %v1352_v1 = vpop.f32.mrb[11].mxu0 }
 0x23d   :  { %v354_v2 = vpop.f32.mrb[8].mxu1 }
 0x23e   :  { %1481 = vpow2.f32 %v368_v63  ;;  %v363_v3 = vsub.f32 %v354_v2, %v354_v2  ;;  %v1357_v4 = vpop.f32.mrb[9].mxu1  ;;  %v1257_v2 = vld [vmem:[%s1818_s5] ss:$0 sm:$0xff] }
 0x23f   :  { %v357_v5 = vpop.f32.mrb[10].mxu1 }
 0x240   :  { %v370_v6 = vmul.f32 1.442695, %v363_v3  ;;  %v1358_v7 = vpop.f32.mrb[11].mxu1 }
 0x242   :  { %1483 = vpow2.f32 %v370_v6 }
 0x244   :  { %v1480_v8 = vpop.eup %1479 }
 0x245   :  { %1485 = vrcp.f32 %v1480_v8 }
 0x248   :  { %v1482_v9 = vpop.eup %1481 }
 0x249   :  { %1487 = vrcp.f32 %v1482_v9 }
 0x24c   :  { %v1484_v10 = vpop.eup %1483 }
 0x24d   :  { %1489 = vrcp.f32 %v1484_v10 }
 0x24f   :  { %v1486_v11 = vpop.eup %1485 }
 0x250   :  { %v381_v14 = vmul.f32 %v1486_v11, %v1480_v8 }
 0x252   :  { %v385_v15 = vpack.c.bf16 %v381_v14, %v381_v14 }
 0x253   :  { %v1488_v16 = vpop.eup %1487 }
 0x254   :  { %1368 = vmatmul.mubr.msk.bf16.vlgmr.msra.gmra.mrb[12].mxu1 %vm390_vm5, %v385_v15  ;;  %v382_v19 = vmul.f32 %v1488_v16, %v1482_v9 }
 0x255   :  { %1378 = vmatpush3.bf16.msra.mxu1 %v542_v17  ;;  %1379 = vmatprep.mubr.msk.bf16.mxu1 %vm1508_vm0, %v1507_v0 }
 0x256   :  { %v386_v20 = vpack.c.bf16 %v382_v19, %v382_v19  ;;  %1391 = vmatprep.subr.bf16.mxu1 %v1507_v0 }
 0x257   :  { %v1490_v21 = vpop.eup %1489 }
 0x258   :  { %1374 = vmatmul.mubr.msk.bf16.vlgmr.msra.gmra.mrb[16].mxu0 %vm390_vm5, %v386_v20  ;;  %v383_v22 = vmul.f32 %v1490_v21, %v1484_v10 }
 0x259   :  { %1387 = vmatprep.mubr.msk.bf16.mxu0 %vm1508_vm0, %v1507_v0  ;;  %1384 = vmatpush3.bf16.msra.mxu0 %v1469_v29 }
 0x25a   :  { %v387_v23 = vpack.c.bf16 %v383_v22, %v383_v22  ;;  %1385 = vmatprep.subr.bf16.mxu0 %v1507_v0 }
 0x25c   :  { %1380 = vmatmul.mubr.msk.bf16.vlgmr.msra.gmra.mrb[16].mxu1 %vm390_vm5, %v387_v23 }
 0x25d   :  { %1395 = vmatprep.mubr.msk.bf16.mxu1 %vm1508_vm0, %v1507_v0  ;;  %1386 = vmatpush3.bf16.msra.mxu0 %v1470_v30 }
 0x25e   :  { %1399 = vmatprep.subr.bf16.mxu0 %v1507_v0  ;;  %1392 = vmatpush3.bf16.msra.mxu1 %v1471_v53 }
 0x25f   :  { %1393 = vmatprep.subr.bf16.mxu1 %v1507_v0 }
 0x262   :  { %1394 = vmatpush3.bf16.msra.mxu1 %v1472_v54 }
 0x263   :  { %1405 = vmatprep.subr.bf16.mxu1 %v1507_v0 }
 0x2b4   :  { %v434_v24 = vpop.f32.mrb[12].mxu0 }
 0x2b5   :  { %v1363_v25 = vpop.f32.mrb[13].mxu0 }
 0x2b6   :  { %v437_v27 = vpop.f32.mrb[14].mxu0 }
 0x2b7   :  { %v1364_v28 = vpop.f32.mrb[15].mxu0 }
 0x327   :  { %v482_v31 = vpop.f32.mrb[12].mxu1 }
 0x328   :  { %585 = vrot.lane.b32.xlu0 %v482_v31, %s1514_s29  ;;  %v1369_v33 = vpop.f32.mrb[13].mxu1 }
 0x329   :  { %v485_v34 = vpop.f32.mrb[14].mxu1 }
 0x32a   :  { %v1370_v35 = vpop.f32.mrb[15].mxu1 }
 0x32b   :  { %v530_v36 = vpop.f32.mrb[16].mxu0 }
 0x32c   :  { %589 = vrot.lane.b32.xlu1 %v530_v36, %s1515_s30  ;;  %v1375_v37 = vpop.f32.mrb[17].mxu0 }
 0x32d   :  { %v533_v39 = vpop.f32.mrb[18].mxu0 }
 0x32e   :  { %v1376_v40 = vpop.f32.mrb[19].mxu0 }
 0x32f   :  { %v578_v41 = vpop.f32.mrb[16].mxu1 }
 0x330   :  { %593 = vrot.lane.b32.xlu0 %v578_v41, %s1516_s9  ;;  %v1381_v42 = vpop.f32.mrb[17].mxu1 }
 0x331   :  { %v581_v43 = vpop.f32.mrb[18].mxu1 }
 0x332   :  { %v1382_v44 = vpop.f32.mrb[19].mxu1 }
 0x39a   :  { %v586_v45 = vpop.permute.xlu0 %585 }
 0x39b   :  { %v596_v47 = vsel %vm175_vm3, %v434_v24, %v586_v45 }
 0x39e   :  { %v590_v46 = vpop.permute.xlu1 %589 }
 0x39f   :  { %v598_v48 = vsel %vm597_vm6, %v596_v47, %v590_v46 }
 0x3a2   :  { %v594_v49 = vpop.permute.xlu0 %593 }
 0x3a3   :  { %v600_v50 = vsel %vm599_vm7, %v598_v48, %v594_v49 }
 0x3a4   :  { %v601_v51 = vadd.f32 %v600_v50, %v1606_v12 }
 0x3a6   :  { %v602_v52 = vpack.c.bf16 %v601_v51, %v601_v51 }
 0x3a8   :  { %1388 = vmatmul.mubr.msk.bf16.vlgmr.msra.gmra.mrb[20].mxu0 %vm49_vm2, %v602_v52 }
 0x3a9   :  { %1401 = vmatprep.mubr.msk.bf16.mxu0 %vm1508_vm0, %v1507_v0 }
 0x47b   :  { %v657_v56 = vpop.f32.mrb[20].mxu0 }
 0x47c   :  { %v658_v57 = vadd.f32 %v657_v56, %v607_v55  ;;  %v1389_v58 = vpop.f32.mrb[21].mxu0 }
 0x47d   :  { %v660_v59 = vpop.f32.mrb[22].mxu0 }
 0x47e   :  { %v663_v60 = vmax.f32 %v658_v57, 0.0  ;;  %v1390_v61 = vpop.f32.mrb[23].mxu0 }
 0x480   :  { %v664_v62 = vadd.f32 %v663_v60, %v601_v51 }
 0x482   :  { %665 = vst.msk [vmem:[%s1816_s8 + $0x1] sm:$0x1] %vm103_vm1, %v664_v62 }
 0x489   :  { %v666_v63 = vld [vmem:[%s1816_s8] sm:$0x3] }
 0x48a   :  { %v667_v1 = vpack.c.bf16 %v666_v63, %v666_v63 }
 0x48c   :  { %1396 = vmatmul.mubr.msk.bf16.vlgmr.msra.gmra.mrb[20].mxu1 %vm49_vm2, %v667_v1 }
 0x48d   :  { %1407 = vmatprep.mubr.msk.bf16.mxu1 %vm1508_vm0, %v1507_v0 }
 0x55f   :  { %v728_v3 = vpop.f32.mrb[20].mxu1 }
 0x560   :  { %v729_v4 = vadd.f32 %v1257_v2, %v728_v3  ;;  %v1397_v5 = vpop.f32.mrb[21].mxu1 }
 0x561   :  { %v731_v6 = vpop.f32.mrb[22].mxu1 }
 0x562   :  { %v734_v7 = vpack.c.bf16 %v729_v4, %v729_v4  ;;  %v1398_v8 = vpop.f32.mrb[23].mxu1 }
 0x564   :  { %738 = vrot.lane.b32.xlu0 %v734_v7, %s1511_s23  ;;  %736 = vrot.lane.b32.xlu1 %v734_v7, %s1509_s22  ;;  %v743_v9 = vsel %vm175_vm3, %v734_v7, 0 }
 0x565   :  { %1400 = vmatpush3.bf16.xpose.msra.mxu0 %v743_v9 }
 0x566   :  { %1411 = vmatprep.subr.bf16.mxu0 %v1507_v0 }
 0x568   :  { %740 = vrot.lane.b32.xlu1 %v734_v7, %s1510_s3 }
 0x56c   :  { %1402 = vmatmul.mubr.msk.bf16.vlgmr.msra.gmra.mrb[24].mxu0 %vm175_vm3, %v1612_v18 }
 0x56d   :  { %1413 = vmatprep.mubr.msk.bf16.mxu0 %vm1508_vm0, %v1507_v0 }
 0x5d6   :  { %v1731_v10 = vpop.permute.xlu0 %738  ;;  %v1733_v11 = vpop.permute.xlu1 %736 }
 0x5d7   :  { %v829_v13 = vsel %vm175_vm3, %v1731_v10, 0  ;;  %v786_v14 = vsel %vm175_vm3, %v1733_v11, 0 }
 0x5d8   :  { %1406 = vmatpush3.bf16.xpose.msra.mxu1 %v786_v14  ;;  %1412 = vmatpush3.bf16.xpose.msra.mxu0 %v829_v13 }
 0x5d9   :  { %1417 = vmatprep.subr.bf16.mxu1 %v1507_v0  ;;  %1423 = vmatprep.subr.bf16.mxu0 %v1507_v0 }
 0x5da   :  { %v1741_v18 = vpop.permute.xlu1 %740 }
 0x5db   :  { %v872_v15 = vsel %vm175_vm3, %v1741_v18, 0 }
 0x5df   :  { %1408 = vmatmul.mubr.msk.bf16.vlgmr.msra.gmra.mrb[24].mxu1 %vm175_vm3, %v1630_v26  ;;  %1414 = vmatmul.mubr.msk.bf16.vlgmr.msra.gmra.mrb[28].mxu0 %vm175_vm3, %v1639_v32 }
 0x5e0   :  { %1418 = vmatpush3.bf16.xpose.msra.mxu1 %v872_v15  ;;  %1419 = vmatprep.mubr.msk.bf16.mxu1 %vm1508_vm0, %v1507_v0 }
 0x5e1   :  { %1425 = vmatprep.mubr.msk.bf16.mxu0 %vm1508_vm0, %v1507_v0  ;;  %1429 = vmatprep.subr.bf16.mxu1 %v1507_v0 }
 0x5e7   :  { %1420 = vmatmul.mubr.msk.bf16.vlgmr.msra.gmra.mrb[28].mxu1 %vm175_vm3, %v1655_v38 }
 0x5e8   :  { %1431 = vmatprep.mubr.msk.bf16.mxu1 %vm1508_vm0, %v1507_v0 }
 0x63f   :  { %v779_v26 = vpop.f32.mrb[24].mxu0 }
 0x640   :  { %v1403_v16 = vpop.f32.mrb[25].mxu0  ;;  %v915_v32 = vsel %vm914_vm8, %v779_v26, -inf }
 0x641   :  { %916 = vmax.xlane.f32.xlu0 %v915_v32  ;;  %v782_v17 = vpop.f32.mrb[26].mxu0 }
 0x642   :  { %v1404_v19 = vpop.f32.mrb[27].mxu0 }
 0x6b2   :  { %v822_v20 = vpop.f32.mrb[24].mxu1  ;;  %v865_v21 = vpop.f32.mrb[28].mxu0 }
 0x6b3   :  { %v1409_v22 = vpop.f32.mrb[25].mxu1  ;;  %v1415_v23 = vpop.f32.mrb[29].mxu0  ;;  %v921_v24 = vsel %vm914_vm8, %v865_v21, -inf  ;;  %v918_v25 = vsel %vm914_vm8, %v822_v20, -inf }
 0x6b4   :  { %922 = vmax.xlane.f32.xlu0 %v921_v24  ;;  %v868_v38 = vpop.f32.mrb[30].mxu0  ;;  %919 = vmax.xlane.f32.xlu1 %v918_v25  ;;  %v825_v27 = vpop.f32.mrb[26].mxu1  ;;  %v1474_v22 = vld [vmem:[%s1819_s6 + $0x8] sm:$0xff]  }
 0x6b5   :  { %v1410_v28 = vpop.f32.mrb[27].mxu1  ;;  %v1416_v29 = vpop.f32.mrb[31].mxu0 }
 0x6ba   :  { %v908_v30 = vpop.f32.mrb[28].mxu1 }
 0x6bb   :  { %v1421_v31 = vpop.f32.mrb[29].mxu1  ;;  %v924_v33 = vsel %vm914_vm8, %v908_v30, -inf }
 0x6bc   :  { %925 = vmax.xlane.f32.xlu0 %v924_v33  ;;  %v911_v34 = vpop.f32.mrb[30].mxu1 }
 0x6bd   :  { %v1422_v35 = vpop.f32.mrb[31].mxu1 }
 0x6c5   :  { %963 = vrot.lane.b32.xlu1 %v734_v7, %s1512_s24 }
 0x6ce   :  { %v917_v36 = vpop.xlane.xlu0 %916 }
 0x6cf   :  { %v927_v37 = vsub.f32 %v779_v26, %v917_v36 }
 0x6d1   :  { %v931_v39 = vmul.f32 1.442695, %v927_v37 }
 0x6d3   :  { %1491 = vpow2.f32 %v931_v39 }
 0x6dd   :  { %v1492_v40 = vpop.eup %1491 }
 0x6de   :  { %v939_v41 = vsel %vm914_vm8, %v1492_v40, 0.0 }
 0x6e9   :  { %940 = vadd.xlane.f32.xlu1 %v939_v41 }
 0x741   :  { %v923_v42 = vpop.xlane.xlu0 %922  ;;  %v920_v43 = vpop.xlane.xlu1 %919 }
 0x742   :  { %v929_v44 = vsub.f32 %v865_v21, %v923_v42  ;;  %v928_v45 = vsub.f32 %v822_v20, %v920_v43  ;;  %v1473_v21 = vld [vmem:[%s1819_s6] sm:$0xff]  }
 0x744   :  { %v935_v46 = vmul.f32 1.442695, %v929_v44  ;;  %v933_v47 = vmul.f32 1.442695, %v928_v45  ;;  %v1177_v44 = vld [vmem:[%s1820_s7] sm:$0x1] }
 0x745   :  { %v964_v48 = vpop.permute.xlu1 %963 }
 0x746   :  { %1493 = vpow2.f32 %v935_v46  ;;  %v970_v49 = vsel %vm394_vm4, %v964_v48, 0 }
 0x747   :  { %1495 = vpow2.f32 %v933_v47  ;;  %1424 = vmatpush3.bf16.msra.mxu0 %v970_v49 }
 0x748   :  { %1435 = vmatprep.subr.bf16.mxu0 %v1507_v0 }
 0x749   :  { %v926_v50 = vpop.xlane.xlu0 %925 }
 0x74a   :  { %v930_v51 = vsub.f32 %v908_v30, %v926_v50 }
 0x74c   :  { %v937_v52 = vmul.f32 1.442695, %v930_v51 }
 0x74e   :  { %1497 = vpow2.f32 %v937_v52 }
 0x750   :  { %v1494_v53 = vpop.eup %1493 }
 0x751   :  { %v1496_v54 = vpop.eup %1495  ;;  %v945_v55 = vsel %vm914_vm8, %v1494_v53, 0.0 }
 0x752   :  { %946 = vadd.xlane.f32.xlu1 %v945_v55  ;;  %v942_v56 = vsel %vm914_vm8, %v1496_v54, 0.0 }
 0x753   :  { %943 = vadd.xlane.f32.xlu0 %v942_v56 }
 0x758   :  { %v1498_v57 = vpop.eup %1497 }
 0x759   :  { %v948_v58 = vsel %vm914_vm8, %v1498_v57, 0.0 }
 0x75a   :  { %949 = vadd.xlane.f32.xlu0 %v948_v58 }
 0x763   :  { %1060 = vrot.lane.b32.xlu1 %v1731_v10, %s1512_s24 }
 0x767   :  { %1108 = vrot.lane.b32.xlu1 %v1741_v18, %s1512_s24 }
 0x770   :  { %1012 = vrot.lane.b32.xlu0 %v1733_v11, %s1512_s24 }
 0x776   :  { %v941_v59 = vpop.xlane.xlu1 %940 }
 0x777   :  { %1499 = vrcp.f32 %v941_v59 }
 0x781   :  { %v1500_v60 = vpop.eup %1499 }
 0x782   :  { %v955_v61 = vmul.f32 %v1500_v60, %v1492_v40 }
 0x784   :  { %v959_v62 = vpack.c.bf16 %v955_v61, %v955_v61 }
 0x786   :  { %1426 = vmatmul.mubr.msk.bf16.vlgmr.msra.gmra.mrb[32].mxu0 %vm965_vm9, %v959_v62 }
 0x787   :  { %1437 = vmatprep.mubr.msk.bf16.mxu0 %vm1508_vm0, %v1507_v0 }
 0x7df   :  { %v947_v63 = vpop.xlane.xlu1 %946 }
 0x7e0   :  { %1501 = vrcp.f32 %v947_v63  ;;  %v944_v1 = vpop.xlane.xlu0 %943 }
 0x7e1   :  { %1503 = vrcp.f32 %v944_v1 }
 0x7e3   :  { %v1061_v2 = vpop.permute.xlu1 %1060 }
 0x7e4   :  { %v1066_v3 = vsel %vm394_vm4, %v1061_v2, 0 }
 0x7e5   :  { %1436 = vmatpush3.bf16.msra.mxu0 %v1066_v3 }
 0x7e6   :  { %1447 = vmatprep.subr.bf16.mxu0 %v1507_v0 }
 0x7e7   :  { %v950_v4 = vpop.xlane.xlu0 %949  ;;  %v1109_v11 = vpop.permute.xlu1 %1108 }
 0x7e8   :  { %1505 = vrcp.f32 %v950_v4  ;;  %v1114_v18 = vsel %vm394_vm4, %v1109_v11, 0 }
 0x7ea   :  { %v1502_v5 = vpop.eup %1501 }
 0x7eb   :  { %v1504_v6 = vpop.eup %1503  ;;  %v957_v7 = vmul.f32 %v1502_v5, %v1494_v53  ;;  %v1013_v8 = vpop.permute.xlu0 %1012 }
 0x7ec   :  { %v956_v9 = vmul.f32 %v1504_v6, %v1496_v54  ;;  %v1018_v10 = vsel %vm394_vm4, %v1013_v8, 0 }
 0x7ed   :  { %1430 = vmatpush3.bf16.msra.mxu1 %v1018_v10  ;;  %v961_v13 = vpack.c.bf16 %v957_v7, %v957_v7 }
 0x7ee   :  { %v960_v14 = vpack.c.bf16 %v956_v9, %v956_v9  ;;  %1441 = vmatprep.subr.bf16.mxu1 %v1507_v0 }
 0x7ef   :  { %1438 = vmatmul.mubr.msk.bf16.vlgmr.msra.gmra.mrb[36].mxu0 %vm965_vm9, %v961_v13 }
 0x7f0   :  { %1432 = vmatmul.mubr.msk.bf16.vlgmr.msra.gmra.mrb[32].mxu1 %vm965_vm9, %v960_v14  ;;  %1451 = vmatprep.mubr.msk.bf16.mxu0 %vm1508_vm0, %v1507_v0 }
 0x7f1   :  { %1442 = vmatpush3.bf16.msra.mxu1 %v1114_v18  ;;  %1443 = vmatprep.mubr.msk.bf16.mxu1 %vm1508_vm0, %v1507_v0 }
 0x7f2   :  { %v1506_v15 = vpop.eup %1505  ;;  %1448 = vmatpush3.bf16.msra.mxu0 %v1473_v21 }
 0x7f3   :  { %v958_v26 = vmul.f32 %v1506_v15, %v1498_v57  ;;  %1449 = vmatprep.subr.bf16.mxu0 %v1507_v0 }
 0x7f5   :  { %v962_v16 = vpack.c.bf16 %v958_v26, %v958_v26 }
 0x7f6   :  { %1450 = vmatpush3.bf16.msra.mxu0 %v1474_v22 }
 0x7f8   :  { %1444 = vmatmul.mubr.msk.bf16.vlgmr.msra.gmra.mrb[36].mxu1 %vm965_vm9, %v962_v16 }
 0x859   :  { %v1006_v32 = vpop.f32.mrb[32].mxu0 }
 0x85a   :  { %v1427_v17 = vpop.f32.mrb[33].mxu0 }
 0x85b   :  { %v1009_v19 = vpop.f32.mrb[34].mxu0 }
 0x85c   :  { %v1428_v20 = vpop.f32.mrb[35].mxu0 }
 0x8c2   :  { %v1102_v23 = vpop.f32.mrb[36].mxu0 }
 0x8c3   :  { %1161 = vrot.lane.b32.xlu1 %v1102_v23, %s1515_s30  ;;  %v1054_v24 = vpop.f32.mrb[32].mxu1  ;;  %v1439_v25 = vpop.f32.mrb[37].mxu0 }
 0x8c4   :  { %v1105_v38 = vpop.f32.mrb[38].mxu0  ;;  %1157 = vrot.lane.b32.xlu0 %v1054_v24, %s1514_s29  ;;  %v1433_v27 = vpop.f32.mrb[33].mxu1 }
 0x8c5   :  { %v1057_v28 = vpop.f32.mrb[34].mxu1  ;;  %v1440_v29 = vpop.f32.mrb[39].mxu0 }
 0x8c6   :  { %v1434_v30 = vpop.f32.mrb[35].mxu1 }
 0x8cb   :  { %v1150_v31 = vpop.f32.mrb[36].mxu1 }
 0x8cc   :  { %1165 = vrot.lane.b32.xlu0 %v1150_v31, %s1516_s9  ;;  %v1445_v0 = vpop.f32.mrb[37].mxu1 }
 0x8cd   :  { %v1153_v33 = vpop.f32.mrb[38].mxu1 }
 0x8ce   :  { %v1446_v34 = vpop.f32.mrb[39].mxu1 }
 0x935   :  { %v1162_v37 = vpop.permute.xlu1 %1161 }
 0x936   :  { %v1158_v35 = vpop.permute.xlu0 %1157 }
 0x937   :  { %v1168_v36 = vsel %vm175_vm3, %v1006_v32, %v1158_v35 }
 0x938   :  { %v1169_v39 = vsel %vm597_vm6, %v1168_v36, %v1162_v37 }
 0x93e   :  { %v1166_v40 = vpop.permute.xlu0 %1165 }
 0x93f   :  { %v1170_v41 = vsel %vm599_vm7, %v1169_v39, %v1166_v40 }
 0x940   :  { %v1171_v42 = vadd.f32 %v1170_v41, %v1606_v12 }
 0x942   :  { %v1172_v43 = vpack.c.bf16 %v1171_v42, %v1171_v42 }
 0x944   :  { %1452 = vmatmul.mubr.msk.bf16.vlgmr.msra.gmra.mrb[40].mxu0 %vm49_vm2, %v1172_v43 }
 0xa17   :  { %v1227_v45 = vpop.f32.mrb[40].mxu0 }
 0xa18   :  { %v1228_v46 = vadd.f32 %v1227_v45, %v1177_v44  ;;  %v1453_v47 = vpop.f32.mrb[41].mxu0 }
 0xa19   :  { %v1230_v48 = vpop.f32.mrb[42].mxu0 }
 0xa1a   :  { %v1233_v49 = vmax.f32 %v1228_v46, 0.0  ;;  %v1454_v50 = vpop.f32.mrb[43].mxu0 }
 0xa1c   :  { %v1234_v51 = vadd.f32 %v1233_v49, %v1171_v42 }
 0xa1e   :  { %1235 = vst.msk [vmem:[%s1816_s8 + $0x2] sm:$0x1] %vm103_vm1, %v1234_v51 }

// kernel: apma_forward.3
= control target key start
LH: loop header
LB: loop body
LE: loop exit
PB: predicated region body
PF: predicated region fallthrough
CT: control target
= control target key end

     0   :  { %v1474_v0 = vmov 0.0   ;;  %vm1475_vm0 = vmmov 0   ;;  %vm118_vm1 = vcmask 130048   ;;  %vm55_vm2 = vcmask 261120   ;;  %s1479_s18 = smov 96   ;;  %s1480_s19 = smov 8   ;;  %s1766_s2 = inlined_call_operand.vmem [shape: bf16[32,32], index: 2, kind: input, shape index: {}]   ;;  %s1767_s4 = inlined_call_operand.vmem [shape: bf16[16,64], index: 4, kind: input, shape index: {}]   ;;  %s1768_s1 = inlined_call_operand.vmem [shape: bf16[2,8,16], index: 1, kind: input, shape index: {}]   ;;  %s1769_s0 = inlined_call_operand.vmem [shape: f32[3,32], index: 0, kind: input, shape index: {}]   ;;  %s1770_s5 = inlined_call_operand.vmem [shape: f32[1,64], index: 5, kind: input, shape index: {}]   ;;  %s1771_s3 = inlined_call_operand.vmem [shape: f32[1,32], index: 3, kind: input, shape index: {}]   ;;  %s1772_s6 = inlined_call_operand.vmem [shape: bf16[32,32], index: 6, kind: input, shape index: {}]   ;;  %s1773_s7 = inlined_call_operand.vmem [shape: f32[1,32], index: 7, kind: input, shape index: {}]   ;;  %s1774_s8 = inlined_call_operand.vmem [shape: f32[2,3,32], index: 8, kind: output, shape index: {}]  }
   0x1   :  { %1296 = vmatprep.subr.bf16.mxu0 %v1474_v0  ;;  %1304 = vmatprep.subr.bf16.mxu1 %v1474_v0  ;;  %v1437_v1 = vld [vmem:[%s1766_s2] sm:$0xff]   ;;  %v1439_v4 = vld [vmem:[%s1766_s2 + $0x8] sm:$0xff]   ;;  %vm228_vm3 = vcmask 64512   ;;  %vm687_vm4 = vcmask 1043456   ;;  %vm585_vm5 = vcmask 59392   ;;  %s1481_s22 = smov 16  }
   0x2   :  { %v1438_v2 = vld [vmem:[%s1767_s4] sm:$0xff]   ;;  %1306 = vmatprep.mubr.msk.bf16.mxu1 %vm1475_vm0, %v1474_v0  ;;  %1300 = vmatprep.mubr.msk.bf16.mxu0 %vm1475_vm0, %v1474_v0  ;;  %s1482_s25 = smov 24   ;;  %vm1095_vm6 = vcmask 195584   ;;  %vm1215_vm7 = vcmask 256000  }
   0x3   :  { %1297 = vmatpush3.bf16.msra.mxu0 %v1437_v1  ;;  %v101_v3 = vld [vmem:[%s1768_s1] sm:$0xf]  ;;  %1305 = vmatpush3.bf16.msra.mxu1 %v1438_v2  ;;  %v102_v7 = vld [vmem:[%s1768_s1 + $0x4] sm:$0xf]  ;;  %s1476_s1 = smov 120  }
   0x4   :  { %1298 = vmatprep.subr.bf16.mxu0 %v1474_v0  ;;  %v30_v5 = vld [vmem:[%s1769_s0] sm:$0x7]  ;;  %1310 = vmatprep.subr.bf16.mxu1 %v1474_v0 }
   0x5   :  { %v31_v6 = vpack.c.bf16 %v30_v5, %v30_v5  ;;  %v1226_v8 = vld [vmem:[%s1770_s5] ss:$0 sm:$0xff]  ;;  %s1478_s5 = smov 104  }
   0x6   :  { %1307 = vmatmul.mubr.msk.bf16.vlgmr.msra.gmra.mrb[0].mxu1 %vm118_vm1, %v101_v3  ;;  %v1222_v12 = vld [vmem:[%s1771_s3] ss:$0 sm:$0xff]  ;;  %s1477_s3 = smov 112  }
   0x7   :  { %1299 = vmatpush3.bf16.msra.mxu0 %v1439_v4  ;;  %1311 = vmatpush3.bf16.msra.mxu1 %v1438_v2 }
   0x8   :  { %1312 = vmatprep.mubr.msk.bf16.mxu1 %vm1475_vm0, %v1474_v0  ;;  %1316 = vmatprep.subr.bf16.mxu0 %v1474_v0 }
   0x9   :  { %1322 = vmatprep.subr.bf16.mxu1 %v1474_v0 }
   0xa   :  { %1301 = vmatmul.mubr.msk.bf16.vlgmr.msra.gmra.mrb[0].mxu0 %vm55_vm2, %v31_v6 }
   0xb   :  { %1318 = vmatprep.mubr.msk.bf16.mxu0 %vm1475_vm0, %v1474_v0 }
   0xe   :  { %1313 = vmatmul.mubr.msk.bf16.vlgmr.msra.gmra.mrb[4].mxu1 %vm118_vm1, %v102_v7 }
   0xf   :  { %1324 = vmatprep.mubr.msk.bf16.mxu1 %vm1475_vm0, %v1474_v0 }
  0xd9   :  { %v156_v9 = vpop.f32.mrb[0].mxu1 }
  0xda   :  { %v157_v10 = vadd.f32 %v1226_v8, %v156_v9  ;;  %v1308_v11 = vpop.f32.mrb[1].mxu1 }
  0xdb   :  { %v159_v13 = vpop.f32.mrb[2].mxu1 }
  0xdc   :  { %v205_v14 = vpack.c.bf16 %v157_v10, %v157_v10  ;;  %v1309_v15 = vpop.f32.mrb[3].mxu1 }
  0xdd   :  { %v93_v16 = vpop.f32.mrb[0].mxu0 }
  0xde   :  { %v1571_v17 = vadd.f32 %v1222_v12, %v93_v16  ;;  %v1302_v18 = vpop.f32.mrb[1].mxu0  ;;  %216 = vrot.lane.b32.xlu0 %v205_v14, %s1476_s1  ;;  %v233_v20 = vsel %vm228_vm3, %v205_v14, 0 }
  0xdf   :  { %v96_v19 = vpop.f32.mrb[2].mxu0  ;;  %1317 = vmatpush3.bf16.xpose.msra.mxu0 %v233_v20 }
  0xe0   :  { %v99_v21 = vmul.f32 0.17677669, %v1571_v17  ;;  %v1303_v22 = vpop.f32.mrb[3].mxu0  ;;  %1328 = vmatprep.subr.bf16.mxu0 %v1474_v0 }
  0xe1   :  { %v199_v24 = vpop.f32.mrb[4].mxu1 }
  0xe2   :  { %v100_v23 = vpack.c.bf16 %v99_v21, %v99_v21  ;;  %v200_v25 = vadd.f32 %v1226_v8, %v199_v24  ;;  %v1314_v26 = vpop.f32.mrb[5].mxu1 }
  0xe3   :  { %v202_v27 = vpop.f32.mrb[6].mxu1 }
  0xe4   :  { %208 = vrot.lane.b32.xlu1 %v100_v23, %s1476_s1  ;;  %v206_v28 = vpack.c.bf16 %v200_v25, %v200_v25  ;;  %v1315_v29 = vpop.f32.mrb[7].mxu1 }
  0xe6   :  { %218 = vrot.lane.b32.xlu0 %v206_v28, %s1476_s1  ;;  %1319 = vmatmul.mubr.msk.bf16.vlgmr.msra.gmra.mrb[4].mxu0 %vm228_vm3, %v100_v23  ;;  %v276_v30 = vsel %vm228_vm3, %v206_v28, 0 }
  0xe7   :  { %1323 = vmatpush3.bf16.xpose.msra.mxu1 %v276_v30  ;;  %1330 = vmatprep.mubr.msk.bf16.mxu0 %vm1475_vm0, %v1474_v0 }
  0xe8   :  { %220 = vrot.lane.b32.xlu1 %v205_v14, %s1477_s3  ;;  %1334 = vmatprep.subr.bf16.mxu1 %v1474_v0 }
  0xea   :  { %222 = vrot.lane.b32.xlu0 %v206_v28, %s1477_s3 }
  0xec   :  { %210 = vrot.lane.b32.xlu1 %v100_v23, %s1477_s3 }
  0xee   :  { %224 = vrot.lane.b32.xlu0 %v205_v14, %s1478_s5  ;;  %1325 = vmatmul.mubr.msk.bf16.vlgmr.msra.gmra.mrb[8].mxu1 %vm228_vm3, %v100_v23 }
  0xef   :  { %1336 = vmatprep.mubr.msk.bf16.mxu1 %vm1475_vm0, %v1474_v0 }
  0xf0   :  { %226 = vrot.lane.b32.xlu1 %v206_v28, %s1478_s5 }
  0xf2   :  { %212 = vrot.lane.b32.xlu0 %v100_v23, %s1478_s5 }
  0xf4   :  { %731 = vrot.lane.b32.xlu1 %v206_v28, %s1479_s18 }
  0xf6   :  { %682 = vrot.lane.b32.xlu0 %v205_v14, %s1479_s18 }
 0x150   :  { %v1586_v31 = vpop.permute.xlu0 %216 }
 0x151   :  { %v322_v32 = vsel %vm228_vm3, %v1586_v31, 0 }
 0x152   :  { %1329 = vmatpush3.bf16.xpose.msra.mxu0 %v322_v32 }
 0x153   :  { %1340 = vmatprep.subr.bf16.mxu0 %v1474_v0 }
 0x156   :  { %v209_v33 = vpop.permute.xlu1 %208 }
 0x158   :  { %v1591_v34 = vpop.permute.xlu0 %218 }
 0x159   :  { %v365_v35 = vsel %vm228_vm3, %v1591_v34, 0  ;;  %1331 = vmatmul.mubr.msk.bf16.vlgmr.msra.gmra.mrb[8].mxu0 %vm228_vm3, %v209_v33 }
 0x15a   :  { %v1596_v36 = vpop.permute.xlu1 %220  ;;  %1335 = vmatpush3.bf16.xpose.msra.mxu1 %v365_v35  ;;  %1342 = vmatprep.mubr.msk.bf16.mxu0 %vm1475_vm0, %v1474_v0 }
 0x15b   :  { %v411_v37 = vsel %vm228_vm3, %v1596_v36, 0  ;;  %1346 = vmatprep.subr.bf16.mxu1 %v1474_v0 }
 0x15c   :  { %1341 = vmatpush3.bf16.xpose.msra.mxu0 %v411_v37  ;;  %v1603_v38 = vpop.permute.xlu0 %222 }
 0x15d   :  { %1352 = vmatprep.subr.bf16.mxu0 %v1474_v0  ;;  %v454_v39 = vsel %vm228_vm3, %v1603_v38, 0 }
 0x15e   :  { %v211_v40 = vpop.permute.xlu1 %210 }
 0x160   :  { %v1608_v41 = vpop.permute.xlu0 %224 }
 0x161   :  { %1337 = vmatmul.mubr.msk.bf16.vlgmr.msra.gmra.mrb[12].mxu1 %vm228_vm3, %v209_v33  ;;  %v500_v42 = vsel %vm228_vm3, %v1608_v41, 0 }
 0x162   :  { %1347 = vmatpush3.bf16.xpose.msra.mxu1 %v454_v39  ;;  %1348 = vmatprep.mubr.msk.bf16.mxu1 %vm1475_vm0, %v1474_v0  ;;  %v1616_v44 = vpop.permute.xlu1 %226 }
 0x163   :  { %1343 = vmatmul.mubr.msk.bf16.vlgmr.msra.gmra.mrb[12].mxu0 %vm228_vm3, %v211_v40  ;;  %1358 = vmatprep.subr.bf16.mxu1 %v1474_v0  ;;  %v543_v45 = vsel %vm228_vm3, %v1616_v44, 0 }
 0x164   :  { %1353 = vmatpush3.bf16.xpose.msra.mxu0 %v500_v42  ;;  %v213_v43 = vpop.permute.xlu0 %212  ;;  %1354 = vmatprep.mubr.msk.bf16.mxu0 %vm1475_vm0, %v1474_v0 }
 0x165   :  { %1364 = vmatprep.subr.bf16.mxu0 %v1474_v0 }
 0x166   :  { %v732_v48 = vpop.permute.xlu1 %731 }
 0x167   :  { %v737_v49 = vsel %vm687_vm4, %v732_v48, 0 }
 0x168   :  { %v683_v46 = vpop.permute.xlu0 %682 }
 0x169   :  { %1349 = vmatmul.mubr.msk.bf16.vlgmr.msra.gmra.mrb[16].mxu1 %vm228_vm3, %v211_v40  ;;  %v689_v47 = vsel %vm687_vm4, %v683_v46, 0 }
 0x16a   :  { %1359 = vmatpush3.bf16.xpose.msra.mxu1 %v543_v45  ;;  %1360 = vmatprep.mubr.msk.bf16.mxu1 %vm1475_vm0, %v1474_v0 }
 0x16b   :  { %1355 = vmatmul.mubr.msk.bf16.vlgmr.msra.gmra.mrb[16].mxu0 %vm228_vm3, %v213_v43  ;;  %1370 = vmatprep.subr.bf16.mxu1 %v1474_v0 }
 0x16c   :  { %1365 = vmatpush3.bf16.msra.mxu0 %v689_v47  ;;  %1366 = vmatprep.mubr.msk.bf16.mxu0 %vm1475_vm0, %v1474_v0 }
 0x16d   :  { %1376 = vmatprep.subr.bf16.mxu0 %v1474_v0 }
 0x171   :  { %1361 = vmatmul.mubr.msk.bf16.vlgmr.msra.gmra.mrb[20].mxu1 %vm228_vm3, %v213_v43 }
 0x172   :  { %1371 = vmatpush3.bf16.msra.mxu1 %v737_v49  ;;  %1372 = vmatprep.mubr.msk.bf16.mxu1 %vm1475_vm0, %v1474_v0 }
 0x173   :  { %1382 = vmatprep.subr.bf16.mxu1 %v1474_v0 }
 0x1b9   :  { %v269_v50 = vpop.f32.mrb[4].mxu0 }
 0x1ba   :  { %v1320_v51 = vpop.f32.mrb[5].mxu0  ;;  %v586_v52 = vsel %vm585_vm5, %v269_v50, -inf }
 0x1bb   :  { %587 = vmax.xlane.f32.xlu1 %v586_v52  ;;  %v272_v53 = vpop.f32.mrb[6].mxu0 }
 0x1bc   :  { %v1321_v54 = vpop.f32.mrb[7].mxu0 }
 0x1c1   :  { %v312_v55 = vpop.f32.mrb[8].mxu1 }
 0x1c2   :  { %v1326_v56 = vpop.f32.mrb[9].mxu1  ;;  %v589_v57 = vsel %vm585_vm5, %v312_v55, -inf }
 0x1c3   :  { %590 = vmax.xlane.f32.xlu0 %v589_v57  ;;  %v315_v58 = vpop.f32.mrb[10].mxu1 }
 0x1c4   :  { %v1327_v59 = vpop.f32.mrb[11].mxu1 }
 0x22c   :  { %v358_v60 = vpop.f32.mrb[8].mxu0 }
 0x22d   :  { %v1332_v61 = vpop.f32.mrb[9].mxu0  ;;  %v592_v62 = vsel %vm585_vm5, %v358_v60, -inf }
 0x22e   :  { %593 = vmax.xlane.f32.xlu0 %v592_v62  ;;  %v361_v63 = vpop.f32.mrb[10].mxu0 }
 0x22f   :  { %v1333_v1 = vpop.f32.mrb[11].mxu0 }
 0x234   :  { %v401_v2 = vpop.f32.mrb[12].mxu1 }
 0x235   :  { %v1338_v3 = vpop.f32.mrb[13].mxu1  ;;  %v595_v4 = vsel %vm585_vm5, %v401_v2, -inf }
 0x236   :  { %v1642_v5 = vpop.f32.mrb[12].mxu0  ;;  %v404_v6 = vpop.f32.mrb[14].mxu1  ;;  %596 = vmax.xlane.f32.xlu1 %v595_v4 }
 0x237   :  { %v1344_v7 = vpop.f32.mrb[13].mxu0  ;;  %v598_v8 = vsel %vm585_vm5, %v1642_v5, -inf  ;;  %v1339_v9 = vpop.f32.mrb[15].mxu1 }
 0x238   :  { %599 = vmax.xlane.f32.xlu0 %v598_v8  ;;  %v450_v10 = vpop.f32.mrb[14].mxu0 }
 0x239   :  { %v1345_v11 = vpop.f32.mrb[15].mxu0 }
 0x23c   :  { %v490_v12 = vpop.f32.mrb[16].mxu1 }
 0x23d   :  { %v1350_v13 = vpop.f32.mrb[17].mxu1  ;;  %v601_v14 = vsel %vm585_vm5, %v490_v12, -inf }
 0x23e   :  { %v1647_v15 = vpop.f32.mrb[16].mxu0  ;;  %v493_v16 = vpop.f32.mrb[18].mxu1  ;;  %602 = vmax.xlane.f32.xlu1 %v601_v14 }
 0x23f   :  { %v1356_v18 = vpop.f32.mrb[17].mxu0  ;;  %v604_v19 = vsel %vm585_vm5, %v1647_v15, -inf  ;;  %v1351_v20 = vpop.f32.mrb[19].mxu1 }
 0x240   :  { %605 = vmax.xlane.f32.xlu0 %v604_v19  ;;  %v539_v21 = vpop.f32.mrb[18].mxu0 }
 0x241   :  { %v1357_v22 = vpop.f32.mrb[19].mxu0 }
 0x244   :  { %v579_v23 = vpop.f32.mrb[20].mxu1 }
 0x245   :  { %v1362_v24 = vpop.f32.mrb[21].mxu1  ;;  %v607_v25 = vsel %vm585_vm5, %v579_v23, -inf }
 0x246   :  { %v582_v26 = vpop.f32.mrb[22].mxu1  ;;  %608 = vmax.xlane.f32.xlu1 %v607_v25 }
 0x247   :  { %v1363_v27 = vpop.f32.mrb[23].mxu1 }
 0x248   :  { %v588_v28 = vpop.xlane.xlu1 %587 }
 0x249   :  { %v610_v29 = vsub.f32 %v269_v50, %v588_v28 }
 0x24b   :  { %v618_v30 = vmul.f32 1.442695, %v610_v29 }
 0x24d   :  { %1442 = vpow2.f32 %v618_v30 }
 0x250   :  { %v591_v32 = vpop.xlane.xlu0 %590 }
 0x251   :  { %v611_v33 = vsub.f32 %v312_v55, %v591_v32 }
 0x253   :  { %v620_v35 = vmul.f32 1.442695, %v611_v33 }
 0x255   :  { %1444 = vpow2.f32 %v620_v35 }
 0x256   :  { %827 = vrot.lane.b32.xlu0 %v1591_v34, %s1479_s18 }
 0x257   :  { %779 = vrot.lane.b32.xlu1 %v1586_v31, %s1479_s18  ;;  %v1443_v37 = vpop.eup %1442 }
 0x258   :  { %v634_v39 = vsel %vm585_vm5, %v1443_v37, 0.0 }
 0x25f   :  { %v1657_v40 = vpop.eup %1444 }
 0x260   :  { %v637_v34 = vsel %vm585_vm5, %v1657_v40, 0.0 }
 0x275   :  { %635 = vadd.xlane.f32.xlu0 %v634_v39 }
 0x27b   :  { %638 = vadd.xlane.f32.xlu1 %v637_v34 }
 0x28c   :  { %875 = vrot.lane.b32.xlu1 %v1596_v36, %s1479_s18 }
 0x2bb   :  { %v594_v31 = vpop.xlane.xlu0 %593 }
 0x2bc   :  { %v612_v42 = vsub.f32 %v358_v60, %v594_v31 }
 0x2be   :  { %v622_v43 = vmul.f32 1.442695, %v612_v42 }
 0x2c0   :  { %1446 = vpow2.f32 %v622_v43 }
 0x2c3   :  { %v597_v45 = vpop.xlane.xlu1 %596 }
 0x2c4   :  { %v613_v46 = vsub.f32 %v401_v2, %v597_v45 }
 0x2c5   :  { %v600_v61 = vpop.xlane.xlu0 %599 }
 0x2c6   :  { %v624_v47 = vmul.f32 1.442695, %v613_v46  ;;  %v614_v62 = vsub.f32 %v1642_v5, %v600_v61 }
 0x2c8   :  { %1448 = vpow2.f32 %v624_v47  ;;  %v626_v1 = vmul.f32 1.442695, %v614_v62 }
 0x2ca   :  { %v1663_v48 = vpop.eup %1446 }
 0x2cb   :  { %v603_v49 = vpop.xlane.xlu1 %602  ;;  %v640_v50 = vsel %vm585_vm5, %v1663_v48, 0.0 }
 0x2cc   :  { %v615_v51 = vsub.f32 %v490_v12, %v603_v49  ;;  %641 = vadd.xlane.f32.xlu0 %v640_v50 }
 0x2cd   :  { %v606_v63 = vpop.xlane.xlu0 %605 }
 0x2ce   :  { %v628_v52 = vmul.f32 1.442695, %v615_v51  ;;  %v616_v2 = vsub.f32 %v1647_v15, %v606_v63 }
 0x2d0   :  { %1450 = vpow2.f32 %v628_v52  ;;  %v630_v3 = vmul.f32 1.442695, %v616_v2  ;;  %v1440_v2 = vld [vmem:[%s1772_s6] sm:$0xff]  }
 0x2d2   :  { %v1667_v53 = vpop.eup %1448 }
 0x2d3   :  { %v609_v36 = vpop.xlane.xlu1 %608  ;;  %v643_v54 = vsel %vm585_vm5, %v1667_v53, 0.0 }
 0x2d4   :  { %v617_v55 = vsub.f32 %v579_v23, %v609_v36  ;;  %644 = vadd.xlane.f32.xlu1 %v643_v54 }
 0x2d6   :  { %v632_v56 = vmul.f32 1.442695, %v617_v55 }
 0x2d7   :  { %v780_v8 = vpop.permute.xlu1 %779 }
 0x2d8   :  { %1452 = vpow2.f32 %v632_v56  ;;  %v785_v13 = vsel %vm687_vm4, %v780_v8, 0 }
 0x2d9   :  { %1454 = vpow2.f32 %v626_v1 }
 0x2da   :  { %v1671_v57 = vpop.eup %1450  ;;  %1456 = vpow2.f32 %v630_v3 }
 0x2db   :  { %v649_v58 = vsel %vm585_vm5, %v1671_v57, 0.0 }
 0x2dc   :  { %650 = vadd.xlane.f32.xlu1 %v649_v58 }
 0x2e2   :  { %v1675_v59 = vpop.eup %1452  ;;  %923 = vrot.lane.b32.xlu0 %v1603_v38, %s1479_s18  ;;  %v828_v38 = vpop.permute.xlu0 %827 }
 0x2e3   :  { %v655_v60 = vsel %vm585_vm5, %v1675_v59, 0.0  ;;  %v1685_v4 = vpop.eup %1454  ;;  %v833_v18 = vsel %vm687_vm4, %v828_v38, 0 }
 0x2e4   :  { %656 = vadd.xlane.f32.xlu1 %v655_v60  ;;  %v646_v6 = vsel %vm585_vm5, %v1685_v4, 0.0  ;;  %v1689_v7 = vpop.eup %1456 }
 0x2e5   :  { %v652_v9 = vsel %vm585_vm5, %v1689_v7, 0.0 }
 0x2f5   :  { %971 = vrot.lane.b32.xlu1 %v1608_v41, %s1479_s18 }
 0x301   :  { %647 = vadd.xlane.f32.xlu0 %v646_v6 }
 0x302   :  { %v636_v5 = vpop.xlane.xlu0 %635 }
 0x303   :  { %1458 = vrcp.f32 %v636_v5 }
 0x305   :  { %653 = vadd.xlane.f32.xlu0 %v652_v9 }
 0x308   :  { %v639_v10 = vpop.xlane.xlu1 %638 }
 0x309   :  { %1460 = vrcp.f32 %v639_v10  ;;  %v1441_v10 = vld [vmem:[%s1772_s6 + $0x8] sm:$0xff]  }
 0x30c   :  { %v876_v20 = vpop.permute.xlu1 %875 }
 0x30d   :  { %v1459_v41 = vpop.eup %1458  ;;  %v881_v25 = vsel %vm687_vm4, %v876_v20, 0 }
 0x30e   :  { %v666_v11 = vmul.f32 %v1459_v41, %v1443_v37 }
 0x310   :  { %v674_v12 = vpack.c.bf16 %v666_v11, %v666_v11 }
 0x312   :  { %1367 = vmatmul.mubr.msk.bf16.vlgmr.msra.gmra.mrb[20].mxu0 %vm228_vm3, %v674_v12 }
 0x313   :  { %1377 = vmatpush3.bf16.msra.mxu0 %v785_v13  ;;  %1378 = vmatprep.mubr.msk.bf16.mxu0 %vm1475_vm0, %v1474_v0  ;;  %v1461_v14 = vpop.eup %1460 }
 0x314   :  { %1388 = vmatprep.subr.bf16.mxu0 %v1474_v0  ;;  %v667_v15 = vmul.f32 %v1461_v14, %v1657_v40 }
 0x316   :  { %v675_v16 = vpack.c.bf16 %v667_v15, %v667_v15 }
 0x318   :  { %1373 = vmatmul.mubr.msk.bf16.vlgmr.msra.gmra.mrb[24].mxu1 %vm228_vm3, %v675_v16 }
 0x319   :  { %1383 = vmatpush3.bf16.msra.mxu1 %v833_v18  ;;  %1384 = vmatprep.mubr.msk.bf16.mxu1 %vm1475_vm0, %v1474_v0 }
 0x31a   :  { %1394 = vmatprep.subr.bf16.mxu1 %v1474_v0 }
 0x31b   :  { %1019 = vrot.lane.b32.xlu0 %v1616_v44, %s1479_s18 }
 0x359   :  { %v642_v19 = vpop.xlane.xlu0 %641 }
 0x35a   :  { %1462 = vrcp.f32 %v642_v19 }
 0x35d   :  { %v924_v28 = vpop.permute.xlu0 %923 }
 0x35e   :  { %v929_v30 = vsel %vm687_vm4, %v924_v28, 0 }
 0x361   :  { %v645_v21 = vpop.xlane.xlu1 %644 }
 0x362   :  { %1464 = vrcp.f32 %v645_v21 }
 0x364   :  { %v1463_v22 = vpop.eup %1462 }
 0x365   :  { %v668_v23 = vmul.f32 %v1463_v22, %v1663_v48 }
 0x367   :  { %v676_v24 = vpack.c.bf16 %v668_v23, %v668_v23 }
 0x369   :  { %v651_v26 = vpop.xlane.xlu1 %650  ;;  %1379 = vmatmul.mubr.msk.bf16.vlgmr.msra.gmra.mrb[24].mxu0 %vm228_vm3, %v676_v24 }
 0x36a   :  { %1466 = vrcp.f32 %v651_v26  ;;  %1389 = vmatpush3.bf16.msra.mxu0 %v881_v25  ;;  %1390 = vmatprep.mubr.msk.bf16.mxu0 %vm1475_vm0, %v1474_v0 }
 0x36b   :  { %1400 = vmatprep.subr.bf16.mxu0 %v1474_v0 }
 0x36c   :  { %v1465_v44 = vpop.eup %1464 }
 0x36d   :  { %v669_v27 = vmul.f32 %v1465_v44, %v1667_v53 }
 0x36f   :  { %v677_v29 = vpack.c.bf16 %v669_v27, %v669_v27 }
 0x371   :  { %1385 = vmatmul.mubr.msk.bf16.vlgmr.msra.gmra.mrb[28].mxu1 %vm228_vm3, %v677_v29  ;;  %v657_v37 = vpop.xlane.xlu1 %656 }
 0x372   :  { %1395 = vmatpush3.bf16.msra.mxu1 %v929_v30  ;;  %1396 = vmatprep.mubr.msk.bf16.mxu1 %vm1475_vm0, %v1474_v0  ;;  %1468 = vrcp.f32 %v657_v37 }
 0x373   :  { %1406 = vmatprep.subr.bf16.mxu1 %v1474_v0 }
 0x374   :  { %v1467_v32 = vpop.eup %1466 }
 0x375   :  { %v671_v33 = vmul.f32 %v1467_v32, %v1671_v57  ;;  %v972_v48 = vpop.permute.xlu1 %971 }
 0x376   :  { %v977_v51 = vsel %vm687_vm4, %v972_v48, 0 }
 0x377   :  { %v679_v35 = vpack.c.bf16 %v671_v33, %v671_v33 }
 0x379   :  { %1397 = vmatmul.mubr.msk.bf16.vlgmr.msra.gmra.mrb[32].mxu1 %vm228_vm3, %v679_v35 }
 0x37a   :  { %1408 = vmatprep.mubr.msk.bf16.mxu1 %vm1475_vm0, %v1474_v0 }
 0x37c   :  { %v1469_v40 = vpop.eup %1468 }
 0x37d   :  { %v673_v31 = vmul.f32 %v1469_v40, %v1675_v59 }
 0x37f   :  { %v681_v46 = vpack.c.bf16 %v673_v31, %v673_v31 }
 0x38e   :  { %v648_v39 = vpop.xlane.xlu0 %647 }
 0x38f   :  { %1470 = vrcp.f32 %v648_v39 }
 0x392   :  { %v654_v34 = vpop.xlane.xlu0 %653 }
 0x393   :  { %1472 = vrcp.f32 %v654_v34  ;;  %v1246_v34 = vld [vmem:[%s1773_s7] ss:$0 sm:$0xff] }
 0x396   :  { %v1020_v42 = vpop.permute.xlu0 %1019 }
 0x397   :  { %v1025_v43 = vsel %vm687_vm4, %v1020_v42, 0 }
 0x398   :  { %1407 = vmatpush3.bf16.msra.mxu1 %v1025_v43 }
 0x399   :  { %v1471_v45 = vpop.eup %1470  ;;  %1420 = vmatprep.subr.bf16.mxu1 %v1474_v0 }
 0x39a   :  { %v670_v47 = vmul.f32 %v1471_v45, %v1685_v4 }
 0x39b   :  { %1409 = vmatmul.mubr.msk.bf16.vlgmr.msra.gmra.mrb[36].mxu1 %vm228_vm3, %v681_v46 }
 0x39c   :  { %v678_v49 = vpack.c.bf16 %v670_v47, %v670_v47  ;;  %1424 = vmatprep.mubr.msk.bf16.mxu1 %vm1475_vm0, %v1474_v0  ;;  %1421 = vmatpush3.bf16.msra.mxu1 %v1440_v2 }
 0x39d   :  { %v1473_v50 = vpop.eup %1472  ;;  %1422 = vmatprep.subr.bf16.mxu1 %v1474_v0 }
 0x39e   :  { %1391 = vmatmul.mubr.msk.bf16.vlgmr.msra.gmra.mrb[28].mxu0 %vm228_vm3, %v678_v49  ;;  %v672_v52 = vmul.f32 %v1473_v50, %v1689_v7 }
 0x39f   :  { %1401 = vmatpush3.bf16.msra.mxu0 %v977_v51  ;;  %1402 = vmatprep.mubr.msk.bf16.mxu0 %vm1475_vm0, %v1474_v0 }
 0x3a0   :  { %1412 = vmatprep.subr.bf16.mxu0 %v1474_v0  ;;  %v680_v53 = vpack.c.bf16 %v672_v52, %v672_v52  ;;  %1423 = vmatpush3.bf16.msra.mxu1 %v1441_v10 }
 0x3a6   :  { %1403 = vmatmul.mubr.msk.bf16.vlgmr.msra.gmra.mrb[32].mxu0 %vm228_vm3, %v680_v53 }
 0x3a7   :  { %1416 = vmatprep.mubr.msk.bf16.mxu0 %vm1475_vm0, %v1474_v0  ;;  %1413 = vmatpush3.bf16.msra.mxu0 %v1440_v2 }
 0x3a8   :  { %1414 = vmatprep.subr.bf16.mxu0 %v1474_v0 }
 0x3ab   :  { %1415 = vmatpush3.bf16.msra.mxu0 %v1441_v10 }
 0x3e5   :  { %v1738_v36 = vpop.f32.mrb[20].mxu0 }
 0x3e6   :  { %v1368_v54 = vpop.f32.mrb[21].mxu0 }
 0x3e7   :  { %v728_v55 = vpop.f32.mrb[22].mxu0 }
 0x3e8   :  { %v1369_v56 = vpop.f32.mrb[23].mxu0 }
 0x3eb   :  { %v773_v57 = vpop.f32.mrb[24].mxu1 }
 0x3ec   :  { %v1374_v58 = vpop.f32.mrb[25].mxu1 }
 0x3ed   :  { %v776_v59 = vpop.f32.mrb[26].mxu1 }
 0x3ee   :  { %v1375_v60 = vpop.f32.mrb[27].mxu1 }
 0x43c   :  { %v821_v61 = vpop.f32.mrb[24].mxu0 }
 0x43d   :  { %1069 = vrot.lane.b32.xlu1 %v821_v61, %s1480_s19  ;;  %v1380_v62 = vpop.f32.mrb[25].mxu0 }
 0x43e   :  { %v824_v63 = vpop.f32.mrb[26].mxu0 }
 0x43f   :  { %v1381_v1 = vpop.f32.mrb[27].mxu0 }
 0x444   :  { %v869_v3 = vpop.f32.mrb[28].mxu1 }
 0x445   :  { %1071 = vrot.lane.b32.xlu0 %v869_v3, %s1480_s19  ;;  %v1386_v4 = vpop.f32.mrb[29].mxu1 }
 0x446   :  { %v872_v38 = vpop.f32.mrb[30].mxu1 }
 0x447   :  { %v1387_v6 = vpop.f32.mrb[31].mxu1 }
 0x44c   :  { %v965_v7 = vpop.f32.mrb[32].mxu1 }
 0x44d   :  { %1079 = vrot.lane.b32.xlu0 %v965_v7, %s1481_s22  ;;  %v1398_v5 = vpop.f32.mrb[33].mxu1 }
 0x44e   :  { %v968_v8 = vpop.f32.mrb[34].mxu1 }
 0x44f   :  { %v1399_v9 = vpop.f32.mrb[35].mxu1 }
 0x46e   :  { %v1061_v41 = vpop.f32.mrb[36].mxu1 }
 0x46f   :  { %1087 = vrot.lane.b32.xlu0 %v1061_v41, %s1482_s25  ;;  %v1410_v0 = vpop.f32.mrb[37].mxu1 }
 0x470   :  { %v1064_v11 = vpop.f32.mrb[38].mxu1 }
 0x471   :  { %v917_v12 = vpop.f32.mrb[28].mxu0  ;;  %v1411_v13 = vpop.f32.mrb[39].mxu1 }
 0x472   :  { %1077 = vrot.lane.b32.xlu1 %v917_v12, %s1481_s22  ;;  %v1392_v14 = vpop.f32.mrb[29].mxu0 }
 0x473   :  { %v920_v15 = vpop.f32.mrb[30].mxu0 }
 0x474   :  { %v1393_v16 = vpop.f32.mrb[31].mxu0 }
 0x479   :  { %v1013_v18 = vpop.f32.mrb[32].mxu0 }
 0x47a   :  { %1085 = vrot.lane.b32.xlu1 %v1013_v18, %s1482_s25  ;;  %v1404_v19 = vpop.f32.mrb[33].mxu0 }
 0x47b   :  { %v1016_v20 = vpop.f32.mrb[34].mxu0 }
 0x47c   :  { %v1405_v21 = vpop.f32.mrb[35].mxu0 }
 0x4af   :  { %v1070_v28 = vpop.permute.xlu1 %1069 }
 0x4b0   :  { %v1091_v32 = vsel %vm228_vm3, %v1738_v36, %v1070_v28 }
 0x4b7   :  { %v1072_v22 = vpop.permute.xlu0 %1071 }
 0x4b8   :  { %v1092_v24 = vsel %vm228_vm3, %v773_v57, %v1072_v22 }
 0x4bf   :  { %v1080_v23 = vpop.permute.xlu0 %1079 }
 0x4c0   :  { %v1094_v25 = vsel %vm118_vm1, %v1092_v24, %v1080_v23 }
 0x4e1   :  { %v1088_v26 = vpop.permute.xlu0 %1087 }
 0x4e2   :  { %v1097_v44 = vsel %vm1095_vm6, %v1094_v25, %v1088_v26 }
 0x4e3   :  { %v1099_v27 = vadd.f32 %v1097_v44, %v1571_v17 }
 0x4e4   :  { %v1078_v30 = vpop.permute.xlu1 %1077 }
 0x4e5   :  { %v1105_v29 = vpack.c.bf16 %v1099_v27, %v1099_v27  ;;  %v1093_v33 = vsel %vm118_vm1, %v1091_v32, %v1078_v30 }
 0x4e7   :  { %1425 = vmatmul.mubr.msk.bf16.vlgmr.msra.gmra.mrb[40].mxu1 %vm55_vm2, %v1105_v29 }
 0x4ec   :  { %v1086_v35 = vpop.permute.xlu1 %1085 }
 0x4ed   :  { %v1096_v37 = vsel %vm1095_vm6, %v1093_v33, %v1086_v35 }
 0x4ee   :  { %v1098_v39 = vadd.f32 %v1096_v37, %v1571_v17 }
 0x4f0   :  { %v1104_v40 = vpack.c.bf16 %v1098_v39, %v1098_v39 }
 0x4f2   :  { %1417 = vmatmul.mubr.msk.bf16.vlgmr.msra.gmra.mrb[36].mxu0 %vm55_vm2, %v1104_v40 }
 0x5ba   :  { %v1205_v31 = vpop.f32.mrb[40].mxu1 }
 0x5bb   :  { %v1206_v42 = vadd.f32 %v1246_v34, %v1205_v31  ;;  %v1426_v43 = vpop.f32.mrb[41].mxu1 }
 0x5bc   :  { %v1208_v45 = vpop.f32.mrb[42].mxu1 }
 0x5bd   :  { %v1212_v46 = vmax.f32 %v1206_v42, 0.0  ;;  %v1427_v47 = vpop.f32.mrb[43].mxu1 }
 0x5bf   :  { %v1214_v48 = vadd.f32 %v1212_v46, %v1099_v27 }
 0x5c1   :  { %1217 = vst.msk [vmem:[%s1774_s8 + $0x4] sm:$0x7] %vm1215_vm7, %v1214_v48 }
 0x5c5   :  { %v1162_v17 = vpop.f32.mrb[36].mxu0 }
 0x5c6   :  { %v1163_v49 = vadd.f32 %v1246_v34, %v1162_v17  ;;  %v1418_v50 = vpop.f32.mrb[37].mxu0 }
 0x5c7   :  { %v1165_v51 = vpop.f32.mrb[38].mxu0 }
 0x5c8   :  { %v1211_v52 = vmax.f32 %v1163_v49, 0.0  ;;  %v1419_v53 = vpop.f32.mrb[39].mxu0 }
 0x5ca   :  { %v1213_v36 = vadd.f32 %v1211_v52, %v1098_v39 }
 0x5cc   :  { %1216 = vst.msk [vmem:[%s1774_s8] sm:$0x7] %vm1215_vm7, %v1213_v36 }

</bundles_post_ra>
